<compile_context>
chip_gen: v7x
topology: tpu7x:2x2x1
jax: 0.10.0
libtpu: 0.0.40
codegen_flags: <defaults>
</compile_context>

<pallas_src>
import functools

import numpy as np
import jax
import jax.numpy as jnp
from jax.experimental import pallas as pl
from jax.experimental.pallas import tpu as pltpu

# ----------------------------------------------------------------------------- config
HID, N_ITER = 32, 2
IN_DIM, EDGE_IN_DIM, REL_TOTAL = 16, 6, 5

HP = 128              # padded hidden / feature width
INP = 128             # padded node-input width
EINP = 128            # padded edge-input width
SND = 6 * HID         # 192
SNDP = 256            # padded LinearBlock width
NPAD = 128            # padded node count
EPAD = 128            # padded edge count
BG = 128              # padded graph count

ALPHA_POOL = 0.6
NEG_SLOPE = 0.2
BN_EPS = 1e-5

_VMEM = pl.BlockSpec(memory_space=pltpu.MemorySpace.VMEM)
_SMEM = pl.BlockSpec(memory_space=pltpu.MemorySpace.SMEM)


# ----------------------------------------------------------------------------- helpers
def _pad_to(a, shape):
    a = jnp.asarray(a, jnp.float32)
    pads = [(0, t - s) for s, t in zip(a.shape, shape)]
    return jnp.pad(a, pads)


def _scal8(vals):
    v = np.zeros((1, 8), np.float32)
    for i, x in enumerate(vals):
        v[0, i] = float(x)
    return jnp.asarray(v)


# --------- in-kernel math helpers (traced inside Pallas kernels) ---------
def _mxdot(a, b):
    # MXU matmul: bf16 operands, f32 accumulation.
    return jnp.dot(a.astype(jnp.bfloat16), b.astype(jnp.bfloat16),
                   preferred_element_type=jnp.float32)


def _mxdot_t(a, b):
    # a @ b.T (contract last dims of both) — flash-attention style dot_general.
    return jax.lax.dot_general(
        a.astype(jnp.bfloat16), b.astype(jnp.bfloat16),
        (((1,), (1,)), ((), ())), preferred_element_type=jnp.float32)


def _prelu(v, a):
    return jnp.where(v > 0, v, a * v)


def _row_mask(n_rows, nvalid):
    rows = jax.lax.broadcasted_iota(jnp.int32, (n_rows, 1), 0).astype(jnp.float32)
    return (rows < nvalid).astype(jnp.float32)


def _bn(v, gamma, beta, mask, nvalid, eps=BN_EPS):
    # train-mode BatchNorm1d with masked (valid-row) batch statistics.
    vm = v * mask
    mean = jnp.sum(vm, axis=0, keepdims=True) / nvalid
    var = jnp.sum(jnp.square(v - mean) * mask, axis=0, keepdims=True) / nvalid
    return ((v - mean) * jax.lax.rsqrt(var + eps) * gamma + beta) * mask


def _gap_block(x, gcn_adj, gat_mask, onehot, w_gat, gat_bias, w_rows, gcn_b, fbtl_b):
    """Fused GlobalAttentionPool: GCN/Linear score + GATConv fusion + segment-softmax pool.

    w_rows rows: 0 = gcn_W^T, 1 = fbtl_W^T, 2 = (W_gat @ att_src)^T, 3 = (W_gat @ att_dst)^T.
    Returns pooled (G, H) features.
    """
    xprime = _mxdot(x, w_gat)                                   # (M, H)
    r = _mxdot_t(w_rows, x)                                     # (8, M) row projections
    r_agg = _mxdot_t(r, gcn_adj)                                # (8, M) GCN-aggregated
    score = (ALPHA_POOL * (r_agg[0:1, :] + gcn_b)
             + (1.0 - ALPHA_POOL) * (r[1:2, :] + fbtl_b))       # (1, M)
    a_src = r[2:3, :]                                           # (1, M)
    a_dst = jnp.sum(x * w_rows[3:4, :], axis=1, keepdims=True)  # (M, 1)

    e = a_dst + a_src                                           # (M, M)
    e = jnp.where(e > 0, e, NEG_SLOPE * e)                      # leaky relu
    e = jnp.where(gat_mask > 0, e, -1e30)
    emax = jnp.max(e, axis=1, keepdims=True)
    p = jnp.exp(e - emax) * gat_mask
    denom = jnp.maximum(jnp.sum(p, axis=1, keepdims=True), 1e-30)
    attn = p * pl.reciprocal(denom, approx=True)
    xf = _mxdot(attn, xprime) + gat_bias                        # (M, H)

    sm = jnp.where(onehot > 0, score, -1e30)                    # (G, M)
    smax = jnp.max(sm, axis=1, keepdims=True)
    ps = jnp.exp(jnp.where(onehot > 0, score - smax, -1e30))
    d2 = jnp.maximum(jnp.sum(ps, axis=1, keepdims=True), 1e-30)
    w = ps * pl.reciprocal(d2, approx=True)                     # (G, M)
    return _mxdot(w, xf)                                        # (G, H)


# ----------------------------------------------------------------------------- kernel 1: fused drug MLP
def _drug_mlp_kernel(x_ref, w1_ref, w2_ref, w3_ref, vec_ref, scal_ref, o_ref):
    nv = scal_ref[0, 0]
    pr1 = scal_ref[0, 1]
    pr2 = scal_ref[0, 2]
    x = x_ref[...]
    mask = _row_mask(x.shape[0], nv)
    vec = vec_ref[...]
    h = _prelu(_mxdot(x, w1_ref[...]) + vec[0:1, :], pr1)
    h = _mxdot(h, w2_ref[...]) + vec[1:2, :]
    h = _prelu(_bn(h, vec[3:4, :], vec[4:5, :], mask, nv), pr2)
    h = _mxdot(h, w3_ref[...]) + vec[2:3, :]
    o_ref[...] = _bn(h, vec[5:6, :], vec[6:7, :], mask, nv)


def run_drug_mlp(gp, mp):
    scal = _scal8([gp["n_nodes"], mp["pr1"], mp["pr2"]])
    return pl.pallas_call(
        _drug_mlp_kernel,
        out_shape=jax.ShapeDtypeStruct((NPAD, HP), jnp.float32),
        in_specs=[_VMEM] * 5 + [_SMEM],
        out_specs=_VMEM,
    )(gp["x"], mp["w1"], mp["w2"], mp["w3"], mp["vec"], scal)


# ----------------------------------------------------------------------------- kernel 2: fused GSP_DMPNN
def _dmpnn_kernel(x_ref, ea_ref, s0_ref, s1_ref, ladj_ref, lgcn_ref, lmask_ref,
                  eoh_ref, eohT_ref, nfe_ref,
                  wu_ref, wv_ref, we_ref,
                  wgat_ref, gbias_ref, wrows_ref,
                  arows_ref, wgout_ref, bgout_ref, scal_ref,
                  o_ref, *, n_iter):
    x = x_ref[...]
    xu = _mxdot(x, wu_ref[...])
    xv = _mxdot(x, wv_ref[...])
    euv = _mxdot(ea_ref[...], we_ref[...])
    edge_attr = (_mxdot(s0_ref[...], xu) + _mxdot(s1_ref[...], xv) + euv) * (1.0 / 3.0)

    ladj = ladj_ref[...]
    lgcn = lgcn_ref[...]
    lmask = lmask_ref[...]
    eoh = eoh_ref[...]
    wgat = wgat_ref[...]
    gbias = gbias_ref[...]
    wrows = wrows_ref[...]
    arows = arows_ref[...]
    wgout = wgout_ref[...]
    bgout = bgout_ref[...]
    gcn_b = scal_ref[0, 0]
    fbtl_b = scal_ref[0, 1]

    out = edge_attr
    outs, logits = [], []
    for it in range(n_iter):
        out = edge_attr + _mxdot(ladj, out)                       # line-graph scatter-add
        gx = _gap_block(out, lgcn, lmask, eoh, wgat, gbias, wrows, gcn_b, fbtl_b)
        gproj = jnp.tanh(_mxdot(gx, wgout) + bgout)               # (G, H)
        outs.append(out)
        logits.append(jnp.sum(gproj * arows[it:it + 1, :], axis=1, keepdims=True)
                      + scal_ref[0, 2 + it])                      # (G, 1)

    # softmax over iterations (per graph)
    m = logits[0]
    for it in range(1, n_iter):
        m = jnp.maximum(m, logits[it])
    exps = [jnp.exp(l - m) for l in logits]
    z = exps[0]
    for it in range(1, n_iter):
        z = z + exps[it]
    zinv = pl.reciprocal(z, approx=True)

    eohT = eohT_ref[...]
    out_final = jnp.zeros_like(outs[0])
    for it in range(n_iter):
        wgraph = jnp.broadcast_to(exps[it] * zinv,
                                  (exps[it].shape[0], outs[0].shape[1]))   # (G, H)
        out_final = out_final + outs[it] * _mxdot(eohT, wgraph)            # per-edge weight

    o_ref[...] = x + _mxdot(nfe_ref[...], out_final)              # scatter edges -> nodes + residual


def run_dmpnn(gp, x, dp, n_iter):
    kern = functools.partial(_dmpnn_kernel, n_iter=n_iter)
    inputs = (x, gp["edge_attr"], gp["s0"], gp["s1"], gp["line_adj"],
              gp["lg_gcn"], gp["lg_mask"], gp["e_onehot"], gp["e_onehot_t"],
              gp["n_from_e"],
              dp["wu"], dp["wv"], dp["we"],
              dp["att"]["wgat"], dp["att"]["gbias"], dp["att"]["wrows"],
              dp["arows"], dp["wgout"], dp["bgout"])
    return pl.pallas_call(
        kern,
        out_shape=jax.ShapeDtypeStruct((NPAD, HP), jnp.float32),
        in_specs=[_VMEM] * len(inputs) + [_SMEM],
        out_specs=_VMEM,
    )(*inputs, dp["scal"])


# ----------------------------------------------------------------------------- kernel 3: fused LinearBlock
def _linear_block_kernel(x_ref, bng_ref, bnb_ref, lb_ref, l1w_ref, lw_ref, scal_ref, o_ref):
    nv = scal_ref[0, 0]
    x = x_ref[...]
    mask = _row_mask(x.shape[0], nv)
    bng = bng_ref[...]
    bnb = bnb_ref[...]
    lb = lb_ref[...]

    h = _bn(x, bng[0:1, :HP], bnb[0:1, :HP], mask, nv)
    x1 = _mxdot(h, l1w_ref[...]) + lb[0:1, :]

    def lin_i(v, i):
        hh = _bn(v, bng[i - 1:i, :], bnb[i - 1:i, :], mask, nv)
        hh = _prelu(hh, scal_ref[0, i - 1])
        w = lw_ref[pl.ds((i - 2) * SNDP, SNDP), :]
        return _mxdot(hh, w) + lb[i - 1:i, :]

    x2 = lin_i(x1, 2)
    x3 = lin_i(x2, 3)
    xa = (x3 + x1) * 0.5
    x4 = lin_i(xa, 4)
    xb = (x4 + xa) * 0.5
    x5 = lin_i(xb, 5)
    o_ref[...] = x5[:, :HP] * mask


def run_linear_block(gp, x, lp):
    scal = _scal8([gp["n_nodes"], lp["pr2"], lp["pr3"], lp["pr4"], lp["pr5"]])
    inputs = (x, lp["bng"], lp["bnb"], lp["lbias"], lp["l1w"], lp["lw"])
    return pl.pallas_call(
        _linear_block_kernel,
        out_shape=jax.ShapeDtypeStruct((NPAD, HP), jnp.float32),
        in_specs=[_VMEM] * len(inputs) + [_SMEM],
        out_specs=_VMEM,
    )(*inputs, scal)


# ----------------------------------------------------------------------------- kernel 4: node-level GAP
def _gap_kernel(x_ref, gcn_ref, mask_ref, oh_ref, wgat_ref, gbias_ref, wrows_ref,
                scal_ref, o_ref):
    o_ref[...] = _gap_block(x_ref[...], gcn_ref[...], mask_ref[...], oh_ref[...],
                            wgat_ref[...], gbias_ref[...], wrows_ref[...],
                            scal_ref[0, 0], scal_ref[0, 1])


def run_gap(gp, x, ap):
    inputs = (x, gp["node_gcn"], gp["node_mask"], gp["node_onehot"],
              ap["wgat"], ap["gbias"], ap["wrows"])
    return pl.pallas_call(
        _gap_kernel,
        out_shape=jax.ShapeDtypeStruct((BG, HP), jnp.float32),
        in_specs=[_VMEM] * len(inputs) + [_SMEM],
        out_specs=_VMEM,
    )(*inputs, ap["scal"])


# ----------------------------------------------------------------------------- kernel 5: co-attention + pooling + score head
def _coatt_alpha(x, g_other, oh, ohT, wx, wg, cb, ca_row):
    gb = _mxdot(ohT, g_other)                                    # broadcast graph feat to nodes
    t = jnp.tanh(_mxdot(x, wx) + cb + _mxdot(gb, wg))
    e = jnp.sum(t * ca_row, axis=1, keepdims=True)               # (N, 1)
    vmask = jnp.sum(ohT, axis=1, keepdims=True)                  # (N, 1) valid-node mask
    gmax = jnp.max(jnp.where(vmask > 0, e, -1e30))               # global max (constant shift)
    p = jnp.exp(e - gmax) * vmask
    pb = jnp.broadcast_to(p, (p.shape[0], oh.shape[0]))          # (N, G)
    den_g = _mxdot(oh, pb)                                       # per-graph denominator
    den_n = _mxdot(ohT, den_g)                                   # broadcast back to nodes
    return pb * pl.reciprocal(jnp.maximum(den_n, 1e-30), approx=True)


def _pair_tail_kernel(xh_ref, xt_ref, gh_ref, gt_ref,
                      ohh_ref, ohhT_ref, oht_ref, ohtT_ref,
                      wx_ref, wg_ref, cb_ref, ca_ref,
                      w1h_ref, w1t_ref, b1_ref, w2_ref, b2_ref, rel_ref,
                      scal_ref, o_ref):
    wx = wx_ref[...]
    wg = wg_ref[...]
    cb = cb_ref[...]
    ca = ca_ref[...]
    xh = xh_ref[...]
    xt = xt_ref[...]
    # TODO(synk): CoAttentionLayer source not provided; cross-attention stand-in kept from ref impl.
    ah = _coatt_alpha(xh, gt_ref[...], ohh_ref[...], ohhT_ref[...], wx, wg, cb, ca)
    at = _coatt_alpha(xt, gh_ref[...], oht_ref[...], ohtT_ref[...], wx, wg, cb, ca)
    h_final = _mxdot(ohh_ref[...], xh * ah)                      # per-graph scatter-add
    t_final = _mxdot(oht_ref[...], xt * at)
    s = _prelu(_mxdot(h_final, w1h_ref[...]) + _mxdot(t_final, w1t_ref[...]) + b1_ref[...],
               scal_ref[0, 0])
    s = _mxdot(s, w2_ref[...]) + b2_ref[...]
    sc = jnp.sum(s * rel_ref[...], axis=1, keepdims=True)        # (G, 1)
    o_ref[...] = jnp.broadcast_to(sc, o_ref.shape)


def run_pair_tail(hg, tg, xh, xt, gh, gt, rel, tp):
    inputs = (xh, xt, gh, gt,
              hg["node_onehot"], hg["node_onehot_t"],
              tg["node_onehot"], tg["node_onehot_t"],
              tp["wx"], tp["wg"], tp["cb"], tp["ca"],
              tp["w1h"], tp["w1t"], tp["b1"], tp["w2"], tp["b2"], rel)
    return pl.pallas_call(
        _pair_tail_kernel,
        out_shape=jax.ShapeDtypeStruct((BG, HP), jnp.float32),
        in_specs=[_VMEM] * len(inputs) + [_SMEM],
        out_specs=_VMEM,
    )(*inputs, tp["scal"])


# ----------------------------------------------------------------------------- forward
def rfsa_forward(hg, tg, rels, prep, n_iter=N_ITER):
    enc = prep["enc"]
    xh = run_drug_mlp(hg, enc["mlp"])
    xt = run_drug_mlp(tg, enc["mlp"])
    xh = run_dmpnn(hg, xh, enc["dmpnn"], n_iter)
    xt = run_dmpnn(tg, xt, enc["dmpnn"], n_iter)
    xh = run_linear_block(hg, xh, enc["lin_block"])
    xt = run_linear_block(tg, xt, enc["lin_block"])

    gh = run_gap(hg, xh, prep["h_gpool"])
    gt = run_gap(tg, xt, prep["t_gpool"])

    # TODO(synk): FeatIntegrationLayer source not provided; stand-in = relation embedding lookup.
    rel = _pad_to(prep["rel_emb"][jnp.asarray(rels)], (BG, HP))

    out = run_pair_tail(hg, tg, xh, xt, gh, gt, rel, prep["tail"])
    n_pairs = int(rels.shape[0])
    return out[:n_pairs, 0]


# ----------------------------------------------------------------------------- synthetic graph data
def make_graph(sizes, key, in_dim, edge_in_dim):
    batch, edges = [], []
    off = 0
    for gi, n in enumerate(sizes):
        batch += [gi] * n
        for i in range(n - 1):
            edges.append((off + i, off + i + 1))
            edges.append((off + i + 1, off + i))
        if n > 2:
            edges.append((off + n - 1, off))
            edges.append((off, off + n - 1))
        off += n
    N, B = off, len(sizes)
    edge_index = np.asarray(edges, dtype=np.int32).T
    E = edge_index.shape[1]
    batch = np.asarray(batch, dtype=np.int32)
    edge_index_batch = batch[edge_index[0]]

    lg = []
    for e1 in range(E):
        u, v = int(edge_index[0, e1]), int(edge_index[1, e1])
        for e2 in range(E):
            if int(edge_index[0, e2]) == v and int(edge_index[1, e2]) != u:
                lg.append((e1, e2))
    lgi = np.asarray(lg, dtype=np.int32).T

    def gcn_adj_and_mask(ei, n_nodes):
        A = np.zeros((n_nodes, n_nodes), np.float32)
        np.add.at(A, (ei[1], ei[0]), 1.0)
        A_sl = A + np.eye(n_nodes, dtype=np.float32)
        deg = A_sl.sum(axis=1)
        dinv = 1.0 / np.sqrt(np.maximum(deg, 1e-12))
        return A_sl * dinv[:, None] * dinv[None, :], (A_sl > 0).astype(np.float32)

    node_gcn, node_mask = gcn_adj_and_mask(edge_index, N)
    lg_gcn, lg_mask = gcn_adj_and_mask(lgi, E)

    node_onehot = np.zeros((B, N), np.float32)
    node_onehot[batch, np.arange(N)] = 1.0
    edge_onehot = np.zeros((B, E), np.float32)
    edge_onehot[edge_index_batch, np.arange(E)] = 1.0
    line_adj = np.zeros((E, E), np.float32)
    np.add.at(line_adj, (lgi[1], lgi[0]), 1.0)
    n_from_e = np.zeros((N, E), np.float32)
    np.add.at(n_from_e, (edge_index[1], np.arange(E)), 1.0)
    s0 = np.zeros((E, N), np.float32)
    s0[np.arange(E), edge_index[0]] = 1.0
    s1 = np.zeros((E, N), np.float32)
    s1[np.arange(E), edge_index[1]] = 1.0

    kx, ke = jax.random.split(key)
    x = jax.random.normal(kx, (N, in_dim), jnp.float32)
    edge_attr = jax.random.normal(ke, (E, edge_in_dim), jnp.float32)

    # pad once; padded layout carried through the whole forward pass
    return dict(
        n_nodes=N, n_edges=E, n_graphs=B,
        x=_pad_to(x, (NPAD, INP)),
        edge_attr=_pad_to(edge_attr, (EPAD, EINP)),
        s0=_pad_to(s0, (EPAD, NPAD)),
        s1=_pad_to(s1, (EPAD, NPAD)),
        line_adj=_pad_to(line_adj, (EPAD, EPAD)),
        lg_gcn=_pad_to(lg_gcn, (EPAD, EPAD)),
        lg_mask=_pad_to(lg_mask, (EPAD, EPAD)),
        e_onehot=_pad_to(edge_onehot, (BG, EPAD)),
        e_onehot_t=_pad_to(edge_onehot.T, (EPAD, BG)),
        n_from_e=_pad_to(n_from_e, (NPAD, EPAD)),
        node_gcn=_pad_to(node_gcn, (NPAD, NPAD)),
        node_mask=_pad_to(node_mask, (NPAD, NPAD)),
        node_onehot=_pad_to(node_onehot, (BG, NPAD)),
        node_onehot_t=_pad_to(node_onehot.T, (NPAD, BG)),
    )


# ----------------------------------------------------------------------------- raw params (module layout)
def init_params(key, in_dim, edge_dim, hid, n_iter, rel_total):
    kit = iter(jax.random.split(key, 256))

    def nrm(shape, scale):
        return jax.random.normal(next(kit), shape, jnp.float32) * scale

    def lin_w(fi, fo):
        return nrm((fi, fo), 1.0 / np.sqrt(fi))

    def lin_b(fo):
        return nrm((fo,), 0.05)

    def gap(c):
        return dict(gcn_W=lin_w(c, 1), gcn_b=jnp.zeros((1,), jnp.float32),
                    fbtl_W=lin_w(c, 1), fbtl_b=lin_b(1),
                    gat=dict(W=lin_w(c, c), att_src=lin_w(c, 1), att_dst=lin_w(c, 1),
                             bias=jnp.zeros((c,), jnp.float32)))

    snd = 6 * hid
    lb = dict(bn1_g=jnp.ones((hid,), jnp.float32), bn1_b=jnp.zeros((hid,), jnp.float32),
              l1_W=lin_w(hid, snd), l1_b=lin_b(snd))
    for i, (fi, fo) in zip(range(2, 6), [(snd, snd), (snd, snd), (snd, snd), (snd, hid)]):
        lb[f"bn{i}_g"] = jnp.ones((snd,), jnp.float32)
        lb[f"bn{i}_b"] = jnp.zeros((snd,), jnp.float32)
        lb[f"pr{i}"] = jnp.float32(0.25)
        lb[f"l{i}_W"] = lin_w(fi, fo)
        lb[f"l{i}_b"] = lin_b(fo)

    mlp = dict(W1=lin_w(in_dim, hid), b1=lin_b(hid), pr1=jnp.float32(0.25),
               W2=lin_w(hid, hid), b2=lin_b(hid),
               bn1_g=jnp.ones((hid,), jnp.float32), bn1_b=jnp.zeros((hid,), jnp.float32),
               pr2=jnp.float32(0.25),
               W3=lin_w(hid, hid), b3=lin_b(hid),
               bn2_g=jnp.ones((hid,), jnp.float32), bn2_b=jnp.zeros((hid,), jnp.float32))

    dmpnn = dict(lin_u_W=lin_w(hid, hid), lin_v_W=lin_w(hid, hid), lin_edge_W=lin_w(edge_dim, hid),
                 att=gap(hid),
                 a=nrm((1, hid, n_iter), float(np.sqrt(6.0 / (hid + n_iter)))),
                 a_bias=jnp.zeros((1, 1, n_iter), jnp.float32),
                 lin_gout_W=lin_w(hid, hid), lin_gout_b=lin_b(hid),
                 lin_block=lb)

    return dict(enc=dict(mlp=mlp, dmpnn=dmpnn),
                h_gpool=gap(hid), t_gpool=gap(hid),
                rel_emb=nrm((rel_total, hid), 0.3),
                coatt=dict(Wx=lin_w(hid, hid), Wg=lin_w(hid, hid), b=lin_b(hid), a=lin_w(hid, 1)),
                lin1_W=lin_w(2 * hid, 2 * hid), lin1_b=lin_b(2 * hid), lin_pr=jnp.float32(0.25),
                lin2_W=lin_w(2 * hid, hid), lin2_b=lin_b(hid))


# ----------------------------------------------------------------------------- params -> padded/fused layout
def _prep_gap(g):
    W = jnp.asarray(g["gat"]["W"], jnp.float32)
    hid = W.shape[0]
    w_rows = jnp.zeros((8, HP), jnp.float32)
    w_rows = w_rows.at[0, :hid].set(g["gcn_W"][:, 0])
    w_rows = w_rows.at[1, :hid].set(g["fbtl_W"][:, 0])
    w_rows = w_rows.at[2, :hid].set((W @ g["gat"]["att_src"])[:, 0])
    w_rows = w_rows.at[3, :hid].set((W @ g["gat"]["att_dst"])[:, 0])
    return dict(
        wgat=_pad_to(W, (HP, HP)),
        gbias=_pad_to(g["gat"]["bias"].reshape(1, hid), (1, HP)),
        wrows=w_rows,
        scal=_scal8([g["gcn_b"][0], g["fbtl_b"][0]]),
        gcn_b=float(g["gcn_b"][0]),
        fbtl_b=float(g["fbtl_b"][0]),
    )


def _prep_mlp(m):
    vec = jnp.zeros((8, HP), jnp.float32)
    vec = vec.at[0, :HID].set(m["b1"])
    vec = vec.at[1, :HID].set(m["b2"])
    vec = vec.at[2, :HID].set(m["b3"])
    vec = vec.at[3, :HID].set(m["bn1_g"])
    vec = vec.at[4, :HID].set(m["bn1_b"])
    vec = vec.at[5, :HID].set(m["bn2_g"])
    vec = vec.at[6, :HID].set(m["bn2_b"])
    return dict(w1=_pad_to(m["W1"], (INP, HP)), w2=_pad_to(m["W2"], (HP, HP)),
                w3=_pad_to(m["W3"], (HP, HP)), vec=vec,
                pr1=float(m["pr1"]), pr2=float(m["pr2"]))


def _prep_linear_block(lb):
    bng = jnp.zeros((8, SNDP), jnp.float32)
    bnb = jnp.zeros((8, SNDP), jnp.float32)
    lbias = jnp.zeros((8, SNDP), jnp.float32)
    bng = bng.at[0, :HID].set(lb["bn1_g"])
    bnb = bnb.at[0, :HID].set(lb["bn1_b"])
    lbias = lbias.at[0, :SND].set(lb["l1_b"])
    for i in range(2, 6):
        bng = bng.at[i - 1, :SND].set(lb[f"bn{i}_g"])
        bnb = bnb.at[i - 1, :SND].set(lb[f"bn{i}_b"])
        nb = lb[f"l{i}_b"].shape[0]
        lbias = lbias.at[i - 1, :nb].set(lb[f"l{i}_b"])
    lw = jnp.zeros((4 * SNDP, SNDP), jnp.float32)
    for k, i in enumerate(range(2, 6)):
        w = lb[f"l{i}_W"]
        lw = lw.at[k * SNDP:k * SNDP + w.shape[0], :w.shape[1]].set(w)
    return dict(bng=bng, bnb=bnb, lbias=lbias,
                l1w=_pad_to(lb["l1_W"], (HP, SNDP)), lw=lw,
                pr2=float(lb["pr2"]), pr3=float(lb["pr3"]),
                pr4=float(lb["pr4"]), pr5=float(lb["pr5"]))


def _prep_dmpnn(d, n_iter):
    att = _prep_gap(d["att"])
    arows = jnp.zeros((8, HP), jnp.float32)
    for it in range(n_iter):
        arows = arows.at[it, :HID].set(d["a"][0, :, it])
    scal = [att["gcn_b"], att["fbtl_b"]] + [float(d["a_bias"][0, 0, it]) for it in range(n_iter)]
    return dict(wu=_pad_to(d["lin_u_W"], (HP, HP)), wv=_pad_to(d["lin_v_W"], (HP, HP)),
                we=_pad_to(d["lin_edge_W"], (EINP, HP)), att=att, arows=arows,
                wgout=_pad_to(d["lin_gout_W"], (HP, HP)),
                bgout=_pad_to(d["lin_gout_b"].reshape(1, -1), (1, HP)),
                scal=_scal8(scal))


def _prep_tail(p):
    ca = p["coatt"]
    w1 = p["lin1_W"]
    return dict(wx=_pad_to(ca["Wx"], (HP, HP)), wg=_pad_to(ca["Wg"], (HP, HP)),
                cb=_pad_to(ca["b"].reshape(1, -1), (1, HP)),
                ca=_pad_to(ca["a"].reshape(1, -1), (1, HP)),
                w1h=_pad_to(w1[:HID, :], (HP, 128)),
                w1t=_pad_to(w1[HID:, :], (HP, 128)),
                b1=_pad_to(p["lin1_b"].reshape(1, -1), (1, 128)),
                w2=_pad_to(p["lin2_W"], (128, HP)),
                b2=_pad_to(p["lin2_b"].reshape(1, -1), (1, HP)),
                scal=_scal8([p["lin_pr"]]))


def prepare_params(p, n_iter):
    return dict(
        enc=dict(mlp=_prep_mlp(p["enc"]["mlp"]),
                 dmpnn=_prep_dmpnn(p["enc"]["dmpnn"], n_iter),
                 lin_block=_prep_linear_block(p["enc"]["dmpnn"]["lin_block"])),
        h_gpool=_prep_gap(p["h_gpool"]),
        t_gpool=_prep_gap(p["t_gpool"]),
        rel_emb=jnp.asarray(p["rel_emb"], jnp.float32),
        tail=_prep_tail(p),
    )


# ----------------------------------------------------------------------------- main
if __name__ == "__main__":
    root = jax.random.PRNGKey(0)
    k_param, k_h, k_t = jax.random.split(root, 3)

    raw_params = init_params(k_param, IN_DIM, EDGE_IN_DIM, HID, N_ITER, REL_TOTAL)
    prep = prepare_params(raw_params, N_ITER)

    h_graph = make_graph([5, 6], k_h, IN_DIM, EDGE_IN_DIM)   # head-drug batch: 2 graphs, 11 nodes
    t_graph = make_graph([6, 4], k_t, IN_DIM, EDGE_IN_DIM)   # tail-drug batch: 2 graphs, 10 nodes
    rels = np.array([1, 3], dtype=np.int32)                  # relation ids per pair

    scores = rfsa_forward(h_graph, t_graph, rels, prep, N_ITER)
    scores = jax.block_until_ready(scores)

    assert scores.shape == (2,)
    assert np.all(np.isfinite(np.asarray(scores)))
    print("KERNEL_OK")
</pallas_src>

<mosaic_0001>
module attributes {stable_mosaic.version = 11 : i64} {
  func.func @_drug_mlp_kernel(%arg0: memref<128x128xf32, #tpu.memory_space<vmem>>, %arg1: memref<128x128xf32, #tpu.memory_space<vmem>>, %arg2: memref<128x128xf32, #tpu.memory_space<vmem>>, %arg3: memref<128x128xf32, #tpu.memory_space<vmem>>, %arg4: memref<8x128xf32, #tpu.memory_space<vmem>>, %arg5: memref<1x8xf32, #tpu.memory_space<smem>>, %arg6: memref<128x128xf32, #tpu.memory_space<vmem>>) attributes {dimension_semantics = [], scalar_prefetch = 0 : i64, scratch_operands = 0 : i64, tpu.core_type = #tpu.core_type<tc>} {
    %c0 = arith.constant 0 : index
    %c0_0 = arith.constant 0 : index
    %0 = memref.load %arg5[%c0, %c0_0] : memref<1x8xf32, #tpu.memory_space<smem>>
    %c0_1 = arith.constant 0 : index
    %c1 = arith.constant 1 : index
    %1 = memref.load %arg5[%c0_1, %c1] : memref<1x8xf32, #tpu.memory_space<smem>>
    %c0_2 = arith.constant 0 : index
    %c2 = arith.constant 2 : index
    %2 = memref.load %arg5[%c0_2, %c2] : memref<1x8xf32, #tpu.memory_space<smem>>
    %c0_3 = arith.constant 0 : index
    %c0_4 = arith.constant 0 : index
    %3 = vector.load %arg0[%c0_3, %c0_4] : memref<128x128xf32, #tpu.memory_space<vmem>>, vector<128x128xf32>
    %4 = tpu.iota {dimensions = array<i32: 0>} : vector<128x1xi32>
    %5 = arith.sitofp %4 : vector<128x1xi32> to vector<128x1xf32>
    %6 = vector.broadcast %0 : f32 to vector<128x1xf32>
    %7 = arith.cmpf olt, %5, %6 : vector<128x1xf32>
    %8 = arith.extui %7 : vector<128x1xi1> to vector<128x1xi32>
    %9 = arith.sitofp %8 : vector<128x1xi32> to vector<128x1xf32>
    %c0_5 = arith.constant 0 : index
    %c0_6 = arith.constant 0 : index
    %10 = vector.load %arg4[%c0_5, %c0_6] : memref<8x128xf32, #tpu.memory_space<vmem>>, vector<8x128xf32>
    %c0_7 = arith.constant 0 : index
    %c0_8 = arith.constant 0 : index
    %11 = vector.load %arg1[%c0_7, %c0_8] : memref<128x128xf32, #tpu.memory_space<vmem>>, vector<128x128xf32>
    %12 = arith.truncf %3 : vector<128x128xf32> to vector<128x128xbf16>
    %13 = arith.truncf %11 : vector<128x128xf32> to vector<128x128xbf16>
    %cst = arith.constant dense<0.000000e+00> : vector<128x128xf32>
    %14 = tpu.matmul %12, %13, %cst {dimension_numbers = #tpu.dot_dimension_numbers<[1], [0], [0], [1], [0, 0, 1, 1], [], []>} : vector<128x128xbf16>, vector<128x128xbf16>, vector<128x128xf32> -> vector<128x128xf32>
    %15 = vector.extract_strided_slice %10 {offsets = [0, 0], sizes = [1, 128], strides = [1, 1]} : vector<8x128xf32> to vector<1x128xf32>
    %16 = vector.broadcast %15 : vector<1x128xf32> to vector<128x128xf32>
    %17 = arith.addf %14, %16 : vector<128x128xf32>
    %cst_9 = arith.constant 0.000000e+00 : f32
    %18 = vector.broadcast %cst_9 : f32 to vector<128x128xf32>
    %19 = arith.cmpf ogt, %17, %18 : vector<128x128xf32>
    %20 = vector.broadcast %1 : f32 to vector<128x128xf32>
    %21 = arith.mulf %20, %17 : vector<128x128xf32>
    %22 = arith.select %19, %17, %21 : vector<128x128xi1>, vector<128x128xf32>
    %c0_10 = arith.constant 0 : index
    %c0_11 = arith.constant 0 : index
    %23 = vector.load %arg2[%c0_10, %c0_11] : memref<128x128xf32, #tpu.memory_space<vmem>>, vector<128x128xf32>
    %24 = arith.truncf %22 : vector<128x128xf32> to vector<128x128xbf16>
    %25 = arith.truncf %23 : vector<128x128xf32> to vector<128x128xbf16>
    %cst_12 = arith.constant dense<0.000000e+00> : vector<128x128xf32>
    %26 = tpu.matmul %24, %25, %cst_12 {dimension_numbers = #tpu.dot_dimension_numbers<[1], [0], [0], [1], [0, 0, 1, 1], [], []>} : vector<128x128xbf16>, vector<128x128xbf16>, vector<128x128xf32> -> vector<128x128xf32>
    %27 = vector.extract_strided_slice %10 {offsets = [1, 0], sizes = [1, 128], strides = [1, 1]} : vector<8x128xf32> to vector<1x128xf32>
    %28 = vector.broadcast %27 : vector<1x128xf32> to vector<128x128xf32>
    %29 = arith.addf %26, %28 : vector<128x128xf32>
    %30 = vector.extract_strided_slice %10 {offsets = [3, 0], sizes = [1, 128], strides = [1, 1]} : vector<8x128xf32> to vector<1x128xf32>
    %31 = vector.extract_strided_slice %10 {offsets = [4, 0], sizes = [1, 128], strides = [1, 1]} : vector<8x128xf32> to vector<1x128xf32>
    %32 = vector.broadcast %9 : vector<128x1xf32> to vector<128x128xf32>
    %33 = arith.mulf %29, %32 : vector<128x128xf32>
    %cst_13 = arith.constant dense<0.000000e+00> : vector<128xf32>
    %34 = vector.multi_reduction <add>, %33, %cst_13 [0] : vector<128x128xf32> to vector<128xf32>
    %35 = vector.shape_cast %34 : vector<128xf32> to vector<1x128xf32>
    %36 = vector.broadcast %0 : f32 to vector<1x128xf32>
    %37 = arith.divf %35, %36 : vector<1x128xf32>
    %38 = vector.broadcast %37 : vector<1x128xf32> to vector<128x128xf32>
    %39 = arith.subf %29, %38 : vector<128x128xf32>
    %40 = arith.mulf %39, %39 : vector<128x128xf32>
    %41 = vector.broadcast %9 : vector<128x1xf32> to vector<128x128xf32>
    %42 = arith.mulf %40, %41 : vector<128x128xf32>
    %cst_14 = arith.constant dense<0.000000e+00> : vector<128xf32>
    %43 = vector.multi_reduction <add>, %42, %cst_14 [0] : vector<128x128xf32> to vector<128xf32>
    %44 = vector.shape_cast %43 : vector<128xf32> to vector<1x128xf32>
    %45 = vector.broadcast %0 : f32 to vector<1x128xf32>
    %46 = arith.divf %44, %45 : vector<1x128xf32>
    %47 = vector.broadcast %37 : vector<1x128xf32> to vector<128x128xf32>
    %48 = arith.subf %29, %47 : vector<128x128xf32>
    %cst_15 = arith.constant 9.99999974E-6 : f32
    %49 = vector.broadcast %cst_15 : f32 to vector<1x128xf32>
    %50 = arith.addf %46, %49 : vector<1x128xf32>
    %51 = math.rsqrt %50 : vector<1x128xf32>
    %52 = vector.broadcast %51 : vector<1x128xf32> to vector<128x128xf32>
    %53 = arith.mulf %48, %52 : vector<128x128xf32>
    %54 = vector.broadcast %30 : vector<1x128xf32> to vector<128x128xf32>
    %55 = arith.mulf %53, %54 : vector<128x128xf32>
    %56 = vector.broadcast %31 : vector<1x128xf32> to vector<128x128xf32>
    %57 = arith.addf %55, %56 : vector<128x128xf32>
    %58 = vector.broadcast %9 : vector<128x1xf32> to vector<128x128xf32>
    %59 = arith.mulf %57, %58 : vector<128x128xf32>
    %cst_16 = arith.constant 0.000000e+00 : f32
    %60 = vector.broadcast %cst_16 : f32 to vector<128x128xf32>
    %61 = arith.cmpf ogt, %59, %60 : vector<128x128xf32>
    %62 = vector.broadcast %2 : f32 to vector<128x128xf32>
    %63 = arith.mulf %62, %59 : vector<128x128xf32>
    %64 = arith.select %61, %59, %63 : vector<128x128xi1>, vector<128x128xf32>
    %c0_17 = arith.constant 0 : index
    %c0_18 = arith.constant 0 : index
    %65 = vector.load %arg3[%c0_17, %c0_18] : memref<128x128xf32, #tpu.memory_space<vmem>>, vector<128x128xf32>
    %66 = arith.truncf %64 : vector<128x128xf32> to vector<128x128xbf16>
    %67 = arith.truncf %65 : vector<128x128xf32> to vector<128x128xbf16>
    %cst_19 = arith.constant dense<0.000000e+00> : vector<128x128xf32>
    %68 = tpu.matmul %66, %67, %cst_19 {dimension_numbers = #tpu.dot_dimension_numbers<[1], [0], [0], [1], [0, 0, 1, 1], [], []>} : vector<128x128xbf16>, vector<128x128xbf16>, vector<128x128xf32> -> vector<128x128xf32>
    %69 = vector.extract_strided_slice %10 {offsets = [2, 0], sizes = [1, 128], strides = [1, 1]} : vector<8x128xf32> to vector<1x128xf32>
    %70 = vector.broadcast %69 : vector<1x128xf32> to vector<128x128xf32>
    %71 = arith.addf %68, %70 : vector<128x128xf32>
    %72 = vector.extract_strided_slice %10 {offsets = [5, 0], sizes = [1, 128], strides = [1, 1]} : vector<8x128xf32> to vector<1x128xf32>
    %73 = vector.extract_strided_slice %10 {offsets = [6, 0], sizes = [1, 128], strides = [1, 1]} : vector<8x128xf32> to vector<1x128xf32>
    %74 = vector.broadcast %9 : vector<128x1xf32> to vector<128x128xf32>
    %75 = arith.mulf %71, %74 : vector<128x128xf32>
    %cst_20 = arith.constant dense<0.000000e+00> : vector<128xf32>
    %76 = vector.multi_reduction <add>, %75, %cst_20 [0] : vector<128x128xf32> to vector<128xf32>
    %77 = vector.shape_cast %76 : vector<128xf32> to vector<1x128xf32>
    %78 = vector.broadcast %0 : f32 to vector<1x128xf32>
    %79 = arith.divf %77, %78 : vector<1x128xf32>
    %80 = vector.broadcast %79 : vector<1x128xf32> to vector<128x128xf32>
    %81 = arith.subf %71, %80 : vector<128x128xf32>
    %82 = arith.mulf %81, %81 : vector<128x128xf32>
    %83 = vector.broadcast %9 : vector<128x1xf32> to vector<128x128xf32>
    %84 = arith.mulf %82, %83 : vector<128x128xf32>
    %cst_21 = arith.constant dense<0.000000e+00> : vector<128xf32>
    %85 = vector.multi_reduction <add>, %84, %cst_21 [0] : vector<128x128xf32> to vector<128xf32>
    %86 = vector.shape_cast %85 : vector<128xf32> to vector<1x128xf32>
    %87 = vector.broadcast %0 : f32 to vector<1x128xf32>
    %88 = arith.divf %86, %87 : vector<1x128xf32>
    %89 = vector.broadcast %79 : vector<1x128xf32> to vector<128x128xf32>
    %90 = arith.subf %71, %89 : vector<128x128xf32>
    %cst_22 = arith.constant 9.99999974E-6 : f32
    %91 = vector.broadcast %cst_22 : f32 to vector<1x128xf32>
    %92 = arith.addf %88, %91 : vector<1x128xf32>
    %93 = math.rsqrt %92 : vector<1x128xf32>
    %94 = vector.broadcast %93 : vector<1x128xf32> to vector<128x128xf32>
    %95 = arith.mulf %90, %94 : vector<128x128xf32>
    %96 = vector.broadcast %72 : vector<1x128xf32> to vector<128x128xf32>
    %97 = arith.mulf %95, %96 : vector<128x128xf32>
    %98 = vector.broadcast %73 : vector<1x128xf32> to vector<128x128xf32>
    %99 = arith.addf %97, %98 : vector<128x128xf32>
    %100 = vector.broadcast %9 : vector<128x1xf32> to vector<128x128xf32>
    %101 = arith.mulf %99, %100 : vector<128x128xf32>
    %c0_23 = arith.constant 0 : index
    %c0_24 = arith.constant 0 : index
    %102 = vector.load %arg6[%c0_23, %c0_24] : memref<128x128xf32, #tpu.memory_space<vmem>>, vector<128x128xf32>
    tpu.vector_store %arg6[%c0_23, %c0_24], %101 {strides = array<i32>} : memref<128x128xf32, #tpu.memory_space<vmem>>, vector<128x128xf32>,
    return
  }
}

</mosaic_0001>

<bundles_post_ra>
// kernel: tpu_custom_call.1
= control target key start
LH: loop header
LB: loop body
LE: loop exit
PB: predicated region body
PF: predicated region fallthrough
CT: control target
= control target key end

     0   :  { %11 = vsyncpa [#allocation3], 0  ;;  %s2120_s0 = inlined_call_operand.hbm [shape: f32[128,128], index: 0, kind: input, shape index: {}]   ;;  %s2121_s1 = inlined_call_operand.hbm [shape: f32[128,128], index: 1, kind: input, shape index: {}]   ;;  %s2122_s2 = inlined_call_operand.hbm [shape: f32[128,128], index: 2, kind: input, shape index: {}]   ;;  %s2123_s3 = inlined_call_operand.hbm [shape: f32[128,128], index: 3, kind: input, shape index: {}]   ;;  %s2124_s4 = inlined_call_operand.vmem [shape: f32[8,128], index: 4, kind: input, shape index: {}]   ;;  %s2125_s5 = inlined_call_operand.vmem [shape: f32[1,8], index: 5, kind: input, shape index: {}]   ;;  %s2126_s6 = inlined_call_operand.hbm [shape: f32[128,128], index: 6, kind: output, shape index: {}]  }
   0x1   :  { %12 = vsyncpa [#allocation7], 0 }
   0x2   :  { %13 = vsyncpa [#allocation10], 0 }
   0x3   :  { %14 = vsyncpa [#allocation5], 0 }
   0x4   :  { %15 = vsyncpa [#allocation4], 0  ;;  %s1419_s21 = smov [#allocation6]   ;;  %s1420_s23 = smov [#allocation2]  }
   0x5   :  { %s33_s22 = sshll.u32 %s1419_s21, 4  ;;  %s21_s24 = sshll.u32 %s1420_s23, 4  ;;  %s34_s22 = int_to_ptr.vmem [resolvable:$true] %s33_s22  ;;  %s1463_s24 = int_to_ptr.vmem [resolvable:$true] %s21_s24 }
   0x6   :  { %s1287_s27 = scalar_lea.hbm %s2121_s1, 2048 }
   0x7   :  { %p1288_p0 = scmp.ne.s32.totalorder %s2121_s1, %s1287_s27  ;;  %p1291_p1 = scmp.lt.u32.totalorder %s1287_s27, %s2121_s1 }
   0x9   :  { %p1293_p2 = pnand %p1291_p1, %p1288_p0 }
   0xb   :  { %1296 = shalt.err (!%p1293_p2)
}
   0xc   :  { %s1297_s8 = scalar_lea.vmem %s34_s22, 2048  ;;  %p1302_p4 = scmp.lt.s32.totalorder %s34_s22, %s34_s22 }
   0xd   :  { %p1298_p3 = scmp.ne.s32.totalorder %s34_s22, %s1297_s8  ;;  %p1303_p5 = scmp.lt.s32.totalorder %s1297_s8, %s1297_s8 }
   0xf   :  { %p1304_p6 = por %p1303_p5, %p1302_p4 }
  0x11   :  { %p1305_p7 = pnand %p1304_p6, %p1298_p3 }
  0x13   :  { %1308 = shalt.err (!%p1305_p7)
}
  0x14   :  { %s1421_s9 = smov 128   ;;  %s1422_s10 = smov 8  }
  0x15   :  { %39 = dma.hbm_to_vmem [thread:$0]  %s2121_s1, 2048, %s34_s22, [#allocation7], %s1421_s9, %s1421_s9, %s1422_s10  }
  0x16   :  { %s1309_s15 = scalar_lea.hbm %s2120_s0, 2048 }
  0x17   :  { %p1310_p8 = scmp.ne.s32.totalorder %s2120_s0, %s1309_s15  ;;  %p1313_p9 = scmp.lt.u32.totalorder %s1309_s15, %s2120_s0 }
  0x19   :  { %p1315_p10 = pnand %p1313_p9, %p1310_p8 }
  0x1b   :  { %1318 = shalt.err (!%p1315_p10)
}
  0x1c   :  { %s1319_s20 = scalar_lea.vmem %s1463_s24, 2048  ;;  %p1324_p12 = scmp.lt.s32.totalorder %s1463_s24, %s1463_s24 }
  0x1d   :  { %p1320_p11 = scmp.ne.s32.totalorder %s1463_s24, %s1319_s20  ;;  %p1325_p13 = scmp.lt.s32.totalorder %s1319_s20, %s1319_s20 }
  0x1f   :  { %p1326_p0 = por %p1325_p13, %p1324_p12 }
  0x21   :  { %p1327_p1 = pnand %p1326_p0, %p1320_p11 }
  0x23   :  { %1330 = shalt.err (!%p1327_p1)
}
  0x24   :  { %27 = dma.hbm_to_vmem [thread:$0]  %s2120_s0, 2048, %s1463_s24, [#allocation3], %s1421_s9, %s1421_s9, %s1422_s10  }
  0x25   :  { %s1423_s22 = smov [#allocation8]   ;;  %s1424_s25 = smov [#allocation9]  }
  0x26   :  { %s45_s23 = sshll.u32 %s1423_s22, 4  ;;  %s57_s26 = sshll.u32 %s1424_s25, 4  ;;  %s46_s23 = int_to_ptr.vmem [resolvable:$true] %s45_s23  ;;  %s1500_s26 = int_to_ptr.vmem [resolvable:$true] %s57_s26 }
  0x27   :  { %s1331_s29 = scalar_lea.hbm %s2122_s2, 2048 }
  0x28   :  { %p1332_p2 = scmp.ne.s32.totalorder %s2122_s2, %s1331_s29  ;;  %p1335_p3 = scmp.lt.u32.totalorder %s1331_s29, %s2122_s2 }
  0x2a   :  { %p1337_p4 = pnand %p1335_p3, %p1332_p2 }
  0x2c   :  { %1340 = shalt.err (!%p1337_p4)
}
  0x2d   :  { %s1341_s0 = scalar_lea.vmem %s46_s23, 2048  ;;  %p1346_p6 = scmp.lt.s32.totalorder %s46_s23, %s46_s23 }
  0x2e   :  { %p1342_p5 = scmp.ne.s32.totalorder %s46_s23, %s1341_s0  ;;  %p1347_p7 = scmp.lt.s32.totalorder %s1341_s0, %s1341_s0 }
  0x30   :  { %p1348_p8 = por %p1347_p7, %p1346_p6 }
  0x32   :  { %p1349_p9 = pnand %p1348_p8, %p1342_p5 }
  0x34   :  { %1352 = shalt.err (!%p1349_p9)
}
  0x35   :  { %51 = dma.hbm_to_vmem [thread:$0]  %s2122_s2, 2048, %s46_s23, [#allocation7], %s1421_s9, %s1421_s9, %s1422_s10  }
  0x36   :  { %s1353_s15 = scalar_lea.hbm %s2123_s3, 2048 }
  0x37   :  { %p1354_p10 = scmp.ne.s32.totalorder %s2123_s3, %s1353_s15  ;;  %p1357_p11 = scmp.lt.u32.totalorder %s1353_s15, %s2123_s3 }
  0x39   :  { %p1359_p12 = pnand %p1357_p11, %p1354_p10 }
  0x3b   :  { %1362 = shalt.err (!%p1359_p12)
}
  0x3c   :  { %s1363_s20 = scalar_lea.vmem %s1500_s26, 2048  ;;  %p1368_p0 = scmp.lt.s32.totalorder %s1500_s26, %s1500_s26 }
  0x3d   :  { %p1364_p13 = scmp.ne.s32.totalorder %s1500_s26, %s1363_s20  ;;  %p1369_p1 = scmp.lt.s32.totalorder %s1363_s20, %s1363_s20 }
  0x3f   :  { %p1370_p2 = por %p1369_p1, %p1368_p0 }
  0x41   :  { %p1371_p3 = pnand %p1370_p2, %p1364_p13 }
  0x43   :  { %1374 = shalt.err (!%p1371_p3)
}
  0x44   :  { %63 = dma.hbm_to_vmem [thread:$0]  %s2123_s3, 2048, %s1500_s26, [#allocation10], %s1421_s9, %s1421_s9, %s1422_s10  }
  0x45   :  { %s72_s23 = sshll.u32 %s2125_s5, 4  ;;  %s73_s23 = int_to_ptr.vmem [resolvable:$true] %s72_s23 }
  0x46   :  { %s1375_s25 = scalar_lea.vmem %s73_s23, 16  ;;  %p1380_p5 = scmp.lt.s32.totalorder %s73_s23, %s73_s23 }
  0x47   :  { %p1376_p4 = scmp.ne.s32.totalorder %s73_s23, %s1375_s25  ;;  %p1381_p6 = scmp.lt.s32.totalorder %s1375_s25, %s1375_s25 }
  0x49   :  { %p1382_p7 = por %p1381_p6, %p1380_p5 }
  0x4b   :  { %p1383_p8 = pnand %p1382_p7, %p1376_p4 }
  0x4d   :  { %1386 = shalt.err (!%p1383_p8)
}
  0x4e   :  { %s1425_s27 = smov [#allocation11]  }
  0x4f   :  { %75 = dma.vmem_to_smem %s73_s23, 16, %s1425_s27, [#allocation5]  }
  0x50   :  { %1409 = dma.done.wait [#allocation3], 2048  }
  0x51   :  { %1410 = vsyncadd [#allocation3], 4294965248 }
  0x52   :  { %1411 = dma.done.wait [#allocation7], 4096  }
  0x53   :  { %1412 = vsyncadd [#allocation7], 4294963200 }
  0x54   :  { %1413 = dma.done.wait [#allocation10], 2048  }
  0x55   :  { %1414 = vsyncadd [#allocation10], 4294965248 }
  0x56   :  { %1415 = dma.done.wait [#allocation5], 16  }
  0x57   :  { %1416 = vsyncadd [#allocation5], 4294967280 }
  0x58   :  { %91 = sfence }
  0x59   :  { %v195_v0 = vld [vmem:[#allocation6] sm:$0xff]  ;;  %v196_v1 = vld [vmem:[#allocation6 + $0x8] sm:$0xff]  ;;  %v197_v2 = vld [vmem:[#allocation6 + $0x10] sm:$0xff]  ;;  %s1093_s3 = sld [smem:[#allocation11 + $0x1]]  ;;  %s93_s28 = sld [smem:[#allocation11]] }
  0x5a   :  { %v219_v3 = vpack.c.bf16 %v196_v1, %v195_v0  ;;  %v198_v4 = vld [vmem:[#allocation6 + $0x18] sm:$0xff]  ;;  %v199_v6 = vld [vmem:[#allocation6 + $0x20] sm:$0xff]  ;;  %v200_v7 = vld [vmem:[#allocation6 + $0x28] sm:$0xff]  ;;  %s1094_s29 = sld [smem:[#allocation11 + $0x2]] }
  0x5b   :  { %v220_v5 = vpack.c.bf16 %v198_v4, %v197_v2  ;;  %v221_v8 = vpack.c.bf16 %v200_v7, %v199_v6  ;;  %v96_v9 = vld [vmem:[#allocation2] sm:$0xff]  ;;  %v97_v10 = vld [vmem:[#allocation2 + $0x8] sm:$0xff]  ;;  %v201_v11 = vld [vmem:[#allocation6 + $0x30] sm:$0xff] }
  0x5c   :  { %1159 = vmatprep.subr.bf16.mxu0 %v219_v3  ;;  %v202_v12 = vld [vmem:[#allocation6 + $0x38] sm:$0xff]  ;;  %v211_v13 = vpack.c.bf16 %v97_v10, %v96_v9  ;;  %v203_v15 = vld [vmem:[#allocation6 + $0x40] sm:$0xff]  ;;  %v204_v16 = vld [vmem:[#allocation6 + $0x48] sm:$0xff] }
  0x5d   :  { %1160 = vmatpush3.bf16.msra.mxu0 %v219_v3  ;;  %v222_v14 = vpack.c.bf16 %v202_v12, %v201_v11  ;;  %v377_v17 = vld [vmem:[#allocation8] sm:$0xff]  ;;  %v378_v18 = vld [vmem:[#allocation8 + $0x8] sm:$0xff]  ;;  %v379_v19 = vld [vmem:[#allocation8 + $0x10] sm:$0xff]  ;;  %v223_v23 = vpack.c.bf16 %v204_v16, %v203_v15 }
  0x5e   :  { %1161 = vmatprep.subr.bf16.mxu0 %v220_v5  ;;  %1175 = vmatprep.mubr.bf16.mxu0 %v211_v13  ;;  %v380_v20 = vld [vmem:[#allocation8 + $0x18] sm:$0xff]  ;;  %v401_v21 = vpack.c.bf16 %v378_v18, %v377_v17  ;;  %v381_v24 = vld [vmem:[#allocation8 + $0x20] sm:$0xff]  ;;  %v382_v25 = vld [vmem:[#allocation8 + $0x28] sm:$0xff] }
  0x5f   :  { %v402_v22 = vpack.c.bf16 %v380_v20, %v379_v19  ;;  %v205_v26 = vld [vmem:[#allocation6 + $0x50] sm:$0xff]  ;;  %v206_v27 = vld [vmem:[#allocation6 + $0x58] sm:$0xff]  ;;  %v403_v28 = vpack.c.bf16 %v382_v25, %v381_v24  ;;  %v207_v32 = vld [vmem:[#allocation6 + $0x60] sm:$0xff] }
  0x60   :  { %1191 = vmatprep.subr.bf16.mxu1 %v401_v21  ;;  %v224_v29 = vpack.c.bf16 %v206_v27, %v205_v26  ;;  %v383_v30 = vld [vmem:[#allocation8 + $0x30] sm:$0xff]  ;;  %v384_v31 = vld [vmem:[#allocation8 + $0x38] sm:$0xff]  ;;  %v208_v33 = vld [vmem:[#allocation6 + $0x68] sm:$0xff] }
  0x61   :  { %1162 = vmatpush3.bf16.msra.mxu0 %v220_v5  ;;  %1192 = vmatpush3.bf16.msra.mxu1 %v401_v21  ;;  %v404_v34 = vpack.c.bf16 %v384_v31, %v383_v30  ;;  %v225_v35 = vpack.c.bf16 %v208_v33, %v207_v32  ;;  %v385_v36 = vld [vmem:[#allocation8 + $0x40] sm:$0xff]  ;;  %v386_v37 = vld [vmem:[#allocation8 + $0x48] sm:$0xff]  ;;  %v209_v38 = vld [vmem:[#allocation6 + $0x70] sm:$0xff] }
  0x62   :  { %1163 = vmatprep.subr.bf16.mxu0 %v221_v8  ;;  %1193 = vmatprep.subr.bf16.mxu1 %v402_v22  ;;  %v210_v39 = vld [vmem:[#allocation6 + $0x78] sm:$0xff]  ;;  %v405_v40 = vpack.c.bf16 %v386_v37, %v385_v36  ;;  %v98_v42 = vld [vmem:[#allocation2 + $0x10] sm:$0xff]  ;;  %v100_v44 = vld [vmem:[#allocation2 + $0x20] sm:$0xff] }
  0x63   :  { %v226_v41 = vpack.c.bf16 %v210_v39, %v209_v38  ;;  %v99_v43 = vld [vmem:[#allocation2 + $0x18] sm:$0xff]  ;;  %v101_v45 = vld [vmem:[#allocation2 + $0x28] sm:$0xff]  ;;  %v102_v48 = vld [vmem:[#allocation2 + $0x30] sm:$0xff] }
  0x64   :  { %v212_v46 = vpack.c.bf16 %v99_v43, %v98_v42  ;;  %v213_v47 = vpack.c.bf16 %v101_v45, %v100_v44  ;;  %v103_v49 = vld [vmem:[#allocation2 + $0x38] sm:$0xff]  ;;  %v104_v50 = vld [vmem:[#allocation2 + $0x40] sm:$0xff]  ;;  %v105_v51 = vld [vmem:[#allocation2 + $0x48] sm:$0xff] }
  0x65   :  { %1164 = vmatpush3.bf16.msra.mxu0 %v221_v8  ;;  %1194 = vmatpush3.bf16.msra.mxu1 %v402_v22  ;;  %v214_v52 = vpack.c.bf16 %v103_v49, %v102_v48  ;;  %v215_v53 = vpack.c.bf16 %v105_v51, %v104_v50  ;;  %v106_v54 = vld [vmem:[#allocation2 + $0x50] sm:$0xff]  ;;  %v107_v55 = vld [vmem:[#allocation2 + $0x58] sm:$0xff]  ;;  %v108_v56 = vld [vmem:[#allocation2 + $0x60] sm:$0xff]  ;;  %v112_v8 = vlaneseq }
  0x66   :  { %1165 = vmatprep.subr.bf16.mxu0 %v222_v14  ;;  %1195 = vmatprep.subr.bf16.mxu1 %v403_v28  ;;  %v109_v57 = vld [vmem:[#allocation2 + $0x68] sm:$0xff]  ;;  %v216_v58 = vpack.c.bf16 %v107_v55, %v106_v54  ;;  %v110_v60 = vld [vmem:[#allocation2 + $0x70] sm:$0xff]  ;;  %v111_v61 = vld [vmem:[#allocation2 + $0x78] sm:$0xff] }
  0x67   :  { %v217_v59 = vpack.c.bf16 %v109_v57, %v108_v56  ;;  %v218_v62 = vpack.c.bf16 %v111_v61, %v110_v60  ;;  %v387_v63 = vld [vmem:[#allocation8 + $0x50] sm:$0xff]  ;;  %v388_v0 = vld [vmem:[#allocation8 + $0x58] sm:$0xff]  ;;  %v389_v2 = vld [vmem:[#allocation8 + $0x60] sm:$0xff]  ;;  %v1540_v9 = vshrl.u32 %v112_v8, 7 }
  0x68   :  { %v406_v1 = vpack.c.bf16 %v388_v0, %v387_v63  ;;  %v390_v3 = vld [vmem:[#allocation8 + $0x68] sm:$0xff]  ;;  %v391_v5 = vld [vmem:[#allocation8 + $0x70] sm:$0xff]  ;;  %v392_v6 = vld [vmem:[#allocation8 + $0x78] sm:$0xff] }
  0x69   :  { %1166 = vmatpush3.bf16.msra.mxu0 %v222_v14  ;;  %1196 = vmatpush3.bf16.msra.mxu1 %v403_v28  ;;  %v407_v4 = vpack.c.bf16 %v390_v3, %v389_v2  ;;  %v408_v7 = vpack.c.bf16 %v392_v6, %v391_v5  ;;  %v229_v10 = vsub.s32 0, %v1540_v9  ;;  %v1546_v11 = vld [vmem:[%s2124_s4] sm:$0xff]  ;;  %v1551_v14 = vstv %s1093_s3 }
  0x6a   :  { %1167 = vmatprep.subr.bf16.mxu0 %v223_v23  ;;  %1197 = vmatprep.subr.bf16.mxu1 %v404_v34 }
  0x6b   :  { %v1549_v12 = vrot.slane %v1546_v11, %v229_v10 }
  0x6d   :  { %1168 = vmatpush3.bf16.msra.mxu0 %v223_v23  ;;  %1198 = vmatpush3.bf16.msra.mxu1 %v404_v34 }
  0x6e   :  { %1169 = vmatprep.subr.bf16.mxu0 %v224_v29  ;;  %1199 = vmatprep.subr.bf16.mxu1 %v405_v40 }
  0x71   :  { %1170 = vmatpush3.bf16.msra.mxu0 %v224_v29  ;;  %1200 = vmatpush3.bf16.msra.mxu1 %v405_v40 }
  0x72   :  { %1171 = vmatprep.subr.bf16.mxu0 %v225_v35  ;;  %1201 = vmatprep.subr.bf16.mxu1 %v406_v1 }
  0x75   :  { %1172 = vmatpush3.bf16.msra.mxu0 %v225_v35  ;;  %1202 = vmatpush3.bf16.msra.mxu1 %v406_v1 }
  0x76   :  { %1173 = vmatprep.subr.bf16.mxu0 %v226_v41  ;;  %1203 = vmatprep.subr.bf16.mxu1 %v407_v4 }
  0x79   :  { %1174 = vmatpush3.bf16.msra.mxu0 %v226_v41  ;;  %1204 = vmatpush3.bf16.msra.mxu1 %v407_v4 }
  0x7a   :  { %1205 = vmatprep.subr.bf16.mxu1 %v408_v7 }
  0x7c   :  { %1176 = vmatmul.mubr.bf16.vlgmr.msra.gmra.mrb[0].mxu0 %v212_v46 }
  0x7d   :  { %1179 = vmatprep.mubr.bf16.mxu0 %v213_v47  ;;  %1206 = vmatpush3.bf16.msra.mxu1 %v408_v7 }
  0x84   :  { %1180 = vmatmul.mubr.bf16.gmra.mrb[4].mxu0 %v214_v52 }
  0x85   :  { %1183 = vmatprep.mubr.bf16.mxu0 %v215_v53 }
  0x8c   :  { %1184 = vmatmul.mubr.bf16.gmra.mrb[8].mxu0 %v216_v58 }
  0x8d   :  { %1187 = vmatprep.mubr.bf16.mxu0 %v217_v59 }
  0x94   :  { %1188 = vmatmul.mubr.bf16.gmra.mrb[12].mxu0 %v218_v62 }
 0x14f   :  { %v1177_v13 = vpop.f32.mrb[0].mxu0 }
 0x150   :  { %v274_v15 = vadd.f32 %v1177_v13, %v1549_v12  ;;  %v265_v16 = vpop.f32.mrb[1].mxu0 }
 0x151   :  { %v266_v17 = vadd.f32 %v265_v16, %v1549_v12  ;;  %v1178_v18 = vpop.f32.mrb[2].mxu0 }
 0x152   :  { %v347_v19 = vmul.f32 %v1551_v14, %v274_v15  ;;  %v277_v20 = vadd.f32 %v1178_v18, %v1549_v12  ;;  %v268_v21 = vpop.f32.mrb[3].mxu0  ;;  %vm330_vm0 = vcmp.gt.f32.partialorder %v274_v15, 0.0 }
 0x153   :  { %v345_v22 = vmul.f32 %v1551_v14, %v266_v17  ;;  %v269_v23 = vadd.f32 %v268_v21, %v1549_v12  ;;  %vm328_vm2 = vcmp.gt.f32.partialorder %v266_v17, 0.0 }
 0x154   :  { %vm331_vm1 = vcmp.gt.f32.partialorder %v277_v20, 0.0  ;;  %v348_v24 = vmul.f32 %v1551_v14, %v277_v20  ;;  %v363_v26 = vsel %vm330_vm0, %v274_v15, %v347_v19 }
 0x155   :  { %v346_v25 = vmul.f32 %v1551_v14, %v269_v23  ;;  %vm329_vm3 = vcmp.gt.f32.partialorder %v269_v23, 0.0  ;;  %v361_v29 = vsel %vm328_vm2, %v266_v17, %v345_v22 }
 0x156   :  { %v364_v27 = vsel %vm331_vm1, %v277_v20, %v348_v24 }
 0x157   :  { %v1181_v28 = vpop.f32.mrb[4].mxu0  ;;  %v362_v30 = vsel %vm329_vm3, %v269_v23, %v346_v25  ;;  %v394_v31 = vpack.c.bf16 %v364_v27, %v363_v26  ;;  %v742_v26 = vld [vmem:[#allocation9] sm:$0xff]  ;;  %v743_v27 = vld [vmem:[#allocation9 + $0x8] sm:$0xff] }
 0x158   :  { %v290_v32 = vadd.f32 %v1181_v28, %v1549_v12  ;;  %v281_v33 = vpop.f32.mrb[5].mxu0  ;;  %v393_v34 = vpack.c.bf16 %v362_v30, %v361_v29  ;;  %v766_v28 = vpack.c.bf16 %v743_v27, %v742_v26  ;;  %v745_v29 = vld [vmem:[#allocation9 + $0x18] sm:$0xff] }
 0x159   :  { %v282_v35 = vadd.f32 %v281_v33, %v1549_v12  ;;  %v1182_v36 = vpop.f32.mrb[6].mxu0  ;;  %v748_v33 = vld [vmem:[#allocation9 + $0x30] sm:$0xff] }
 0x15a   :  { %v351_v37 = vmul.f32 %v1551_v14, %v290_v32  ;;  %v293_v38 = vadd.f32 %v1182_v36, %v1549_v12  ;;  %v284_v39 = vpop.f32.mrb[7].mxu0  ;;  %1207 = vmatprep.mubr.bf16.mxu1 %v393_v34  ;;  %vm334_vm4 = vcmp.gt.f32.partialorder %v290_v32, 0.0  ;;  %1223 = vmatprep.subr.bf16.mxu0 %v766_v28  ;;  %v749_v34 = vld [vmem:[#allocation9 + $0x38] sm:$0xff]  ;;  %v750_v36 = vld [vmem:[#allocation9 + $0x40] sm:$0xff] }
 0x15b   :  { %v349_v40 = vmul.f32 %v1551_v14, %v282_v35  ;;  %v285_v41 = vadd.f32 %v284_v39, %v1549_v12  ;;  %1208 = vmatmul.mubr.bf16.vlgmr.msra.gmra.mrb[0].mxu1 %v394_v31  ;;  %vm332_vm5 = vcmp.gt.f32.partialorder %v282_v35, 0.0  ;;  %1255 = vmatprep.subr.bf16.mxu1 %v766_v28  ;;  %v747_v31 = vld [vmem:[#allocation9 + $0x28] sm:$0xff]  ;;  %v114_v39 = vadd.s32 8, %v1540_v9 }
 0x15c   :  { %vm335_vm6 = vcmp.gt.f32.partialorder %v293_v38, 0.0  ;;  %v352_v42 = vmul.f32 %v1551_v14, %v293_v38  ;;  %v367_v44 = vsel %vm334_vm4, %v290_v32, %v351_v37  ;;  %1224 = vmatpush3.bf16.msra.mxu0 %v766_v28  ;;  %1263 = vmatpush3.bf16.msra.mxu1 %v766_v28  ;;  %v751_v37 = vld [vmem:[#allocation9 + $0x48] sm:$0xff] }
 0x15d   :  { %vm333_vm7 = vcmp.gt.f32.partialorder %v285_v41, 0.0  ;;  %v350_v43 = vmul.f32 %v1551_v14, %v285_v41  ;;  %v365_v47 = vsel %vm332_vm5, %v282_v35, %v349_v40  ;;  %v769_v35 = vpack.c.bf16 %v749_v34, %v748_v33  ;;  %v752_v40 = vld [vmem:[#allocation9 + $0x50] sm:$0xff] }
 0x15e   :  { %v368_v45 = vsel %vm335_vm6, %v293_v38, %v352_v42  ;;  %v770_v38 = vpack.c.bf16 %v751_v37, %v750_v36  ;;  %v115_v42 = vadd.s32 16, %v1540_v9  ;;  %v124_v37 = vadd.s32 88, %v1540_v9 }
 0x15f   :  { %v1185_v46 = vpop.f32.mrb[8].mxu0  ;;  %v366_v48 = vsel %vm333_vm7, %v285_v41, %v350_v43  ;;  %v396_v49 = vpack.c.bf16 %v368_v45, %v367_v44  ;;  %v753_v41 = vld [vmem:[#allocation9 + $0x58] sm:$0xff]  ;;  %v411_v43 = vsub.s32 1, %v1540_v9  ;;  %v129_v45 = vcvt.s32.f32 %v1540_v9 }
 0x160   :  { %v306_v50 = vadd.f32 %v1185_v46, %v1549_v12  ;;  %v297_v51 = vpop.f32.mrb[9].mxu0  ;;  %v395_v52 = vpack.c.bf16 %v366_v48, %v365_v47  ;;  %v771_v44 = vpack.c.bf16 %v753_v41, %v752_v40  ;;  %v116_v46 = vadd.s32 24, %v1540_v9 }
 0x161   :  { %v298_v53 = vadd.f32 %v297_v51, %v1549_v12  ;;  %v1186_v54 = vpop.f32.mrb[10].mxu0  ;;  %v130_v47 = vcvt.s32.f32 %v114_v39  ;;  %v1590_v48 = vstv %s93_s28  ;;  %v756_v51 = vld [vmem:[#allocation9 + $0x70] sm:$0xff] }
 0x162   :  { %v355_v55 = vmul.f32 %v1551_v14, %v306_v50  ;;  %v309_v56 = vadd.f32 %v1186_v54, %v1549_v12  ;;  %v300_v57 = vpop.f32.mrb[11].mxu0  ;;  %1211 = vmatprep.mubr.bf16.mxu1 %v395_v52  ;;  %vm338_vm8 = vcmp.gt.f32.partialorder %v306_v50, 0.0  ;;  %v131_v52 = vcvt.s32.f32 %v115_v42 }
 0x163   :  { %v353_v58 = vmul.f32 %v1551_v14, %v298_v53  ;;  %v301_v59 = vadd.f32 %v300_v57, %v1549_v12  ;;  %1212 = vmatmul.mubr.bf16.gmra.mrb[4].mxu1 %v396_v49  ;;  %vm336_vm9 = vcmp.gt.f32.partialorder %v298_v53, 0.0  ;;  %v754_v49 = vld [vmem:[#allocation9 + $0x60] sm:$0xff]  ;;  %v117_v54 = vadd.s32 32, %v1540_v9 }
 0x164   :  { %vm339_vm10 = vcmp.gt.f32.partialorder %v309_v56, 0.0  ;;  %v356_v60 = vmul.f32 %v1551_v14, %v309_v56  ;;  %v371_v62 = vsel %vm338_vm8, %v306_v50, %v355_v55  ;;  %v755_v50 = vld [vmem:[#allocation9 + $0x68] sm:$0xff]  ;;  %vm1597_vm0 = vcmp.lt.f32.partialorder %v129_v45, %v1590_v48 }
 0x165   :  { %vm337_vm11 = vcmp.gt.f32.partialorder %v301_v59, 0.0  ;;  %v354_v61 = vmul.f32 %v1551_v14, %v301_v59  ;;  %v369_v1 = vsel %vm336_vm9, %v298_v53, %v353_v58  ;;  %v1593_v53 = vrot.slane %v1546_v11, %v411_v43 }
 0x166   :  { %v372_v63 = vsel %vm339_vm10, %v309_v56, %v356_v60  ;;  %v772_v55 = vpack.c.bf16 %v755_v50, %v754_v49  ;;  %v757_v56 = vld [vmem:[#allocation9 + $0x78] sm:$0xff]  ;;  %v132_v60 = vcvt.s32.f32 %v116_v46  ;;  %vm1602_vm1 = vcmp.lt.f32.partialorder %v130_v47, %v1590_v48 }
 0x167   :  { %v1189_v0 = vpop.f32.mrb[12].mxu0  ;;  %v370_v2 = vsel %vm337_vm11, %v301_v59, %v354_v61  ;;  %v398_v3 = vpack.c.bf16 %v372_v63, %v371_v62  ;;  %v773_v57 = vpack.c.bf16 %v757_v56, %v756_v51  ;;  %v118_v62 = vadd.s32 40, %v1540_v9 }
 0x168   :  { %v322_v4 = vadd.f32 %v1189_v0, %v1549_v12  ;;  %v313_v5 = vpop.f32.mrb[13].mxu0  ;;  %v397_v6 = vpack.c.bf16 %v370_v2, %v369_v1  ;;  %v119_v0 = vadd.s32 48, %v1540_v9  ;;  %vm148_vm2 = vcmp.lt.f32.partialorder %v131_v52, %v1590_v48 }
 0x169   :  { %v314_v7 = vadd.f32 %v313_v5, %v1549_v12  ;;  %v1190_v8 = vpop.f32.mrb[14].mxu0  ;;  %vm149_vm3 = vcmp.lt.f32.partialorder %v132_v60, %v1590_v48  ;;  %v125_v49 = vadd.s32 96, %v1540_v9  ;;  %v140_v51 = vcvt.s32.f32 %v124_v37 }
 0x16a   :  { %v359_v10 = vmul.f32 %v1551_v14, %v322_v4  ;;  %v325_v13 = vadd.f32 %v1190_v8, %v1549_v12  ;;  %v316_v15 = vpop.f32.mrb[15].mxu0  ;;  %1215 = vmatprep.mubr.bf16.mxu1 %v397_v6  ;;  %vm342_vm12 = vcmp.gt.f32.partialorder %v322_v4, 0.0  ;;  %v120_v8 = vadd.s32 56, %v1540_v9 }
 0x16b   :  { %v357_v16 = vmul.f32 %v1551_v14, %v314_v7  ;;  %v317_v17 = vadd.f32 %v316_v15, %v1549_v12  ;;  %1216 = vmatmul.mubr.bf16.gmra.mrb[8].mxu1 %v398_v3  ;;  %vm340_vm13 = vcmp.gt.f32.partialorder %v314_v7, 0.0  ;;  %v744_v12 = vld [vmem:[#allocation9 + $0x10] sm:$0xff]  ;;  %v133_v3 = vcvt.s32.f32 %v117_v54 }
 0x16c   :  { %vm343_vm14 = vcmp.gt.f32.partialorder %v325_v13, 0.0  ;;  %v360_v18 = vmul.f32 %v1551_v14, %v325_v13  ;;  %v375_v20 = vsel %vm342_vm12, %v322_v4, %v359_v10  ;;  %v767_v30 = vpack.c.bf16 %v745_v29, %v744_v12 }
 0x16d   :  { %vm341_vm15 = vcmp.gt.f32.partialorder %v317_v17, 0.0  ;;  %v358_v19 = vmul.f32 %v1551_v14, %v317_v17  ;;  %v373_v22 = vsel %vm340_vm13, %v314_v7, %v357_v16  ;;  %v746_v14 = vld [vmem:[#allocation9 + $0x20] sm:$0xff]  ;;  %v1426_v4 = vmov 0.0  }
 0x16e   :  { %v376_v21 = vsel %vm343_vm14, %v325_v13, %v360_v18  ;;  %1225 = vmatprep.subr.bf16.mxu0 %v767_v30  ;;  %1256 = vmatprep.subr.bf16.mxu1 %v767_v30  ;;  %v768_v32 = vpack.c.bf16 %v747_v31, %v746_v14  ;;  %v1615_v5 = vsel %vm1597_vm0, 1.0, %v1426_v4  ;;  %v1620_v6 = vsel %vm1602_vm1, 1.0, %v1426_v4 }
 0x16f   :  { %v374_v23 = vsel %vm341_vm15, %v317_v17, %v358_v19  ;;  %v400_v24 = vpack.c.bf16 %v376_v21, %v375_v20  ;;  %1226 = vmatpush3.bf16.msra.mxu0 %v767_v30  ;;  %1264 = vmatpush3.bf16.msra.mxu1 %v767_v30  ;;  %v134_v15 = vcvt.s32.f32 %v118_v62  ;;  %v1631_v16 = vsel %vm148_vm2, 1.0, %v1426_v4 }
 0x170   :  { %v399_v25 = vpack.c.bf16 %v374_v23, %v373_v22  ;;  %1227 = vmatprep.subr.bf16.mxu0 %v768_v32  ;;  %1257 = vmatprep.subr.bf16.mxu1 %v768_v32  ;;  %v135_v17 = vcvt.s32.f32 %v119_v0  ;;  %v121_v18 = vadd.s32 64, %v1540_v9  ;;  %vm150_vm4 = vcmp.lt.f32.partialorder %v133_v3, %v1590_v48 }
 0x171   :  { %v1643_v22 = vsel %vm149_vm3, 1.0, %v1426_v4  ;;  %v136_v23 = vcvt.s32.f32 %v120_v8  ;;  %vm151_vm5 = vcmp.lt.f32.partialorder %v134_v15, %v1590_v48  ;;  %v1650_v28 = vsel %vm150_vm4, 1.0, %v1426_v4 }
 0x172   :  { %1219 = vmatprep.mubr.bf16.mxu1 %v399_v25  ;;  %v123_v29 = vadd.s32 80, %v1540_v9  ;;  %v137_v30 = vcvt.s32.f32 %v121_v18  ;;  %vm152_vm6 = vcmp.lt.f32.partialorder %v135_v17, %v1590_v48  ;;  %v126_v52 = vadd.s32 104, %v1540_v9 }
 0x173   :  { %1220 = vmatmul.mubr.bf16.gmra.mrb[12].mxu1 %v400_v24  ;;  %1228 = vmatpush3.bf16.msra.mxu0 %v768_v32  ;;  %v122_v24 = vadd.s32 72, %v1540_v9  ;;  %vm1660_vm7 = vcmp.lt.f32.partialorder %v136_v23, %v1590_v48  ;;  %v1677_v43 = vsel %vm152_vm6, 1.0, %v1426_v4  ;;  %v127_v60 = vadd.s32 112, %v1540_v9 }
 0x174   :  { %1265 = vmatpush3.bf16.msra.mxu1 %v768_v32  ;;  %1229 = vmatprep.subr.bf16.mxu0 %v769_v35  ;;  %vm154_vm8 = vcmp.lt.f32.partialorder %v137_v30, %v1590_v48  ;;  %v1689_v50 = vsel %vm1660_vm7, 1.0, %v1426_v4  ;;  %vm157_vm11 = vcmp.lt.f32.partialorder %v140_v51, %v1590_v48  ;;  %v128_v8 = vadd.s32 120, %v1540_v9 }
 0x175   :  { %1258 = vmatprep.subr.bf16.mxu1 %v769_v35  ;;  %v142_v15 = vcvt.s32.f32 %v126_v52  ;;  %1280 = vrcp.f32 %v1590_v48 }
 0x177   :  { %1230 = vmatpush3.bf16.msra.mxu0 %v769_v35  ;;  %vm159_vm13 = vcmp.lt.f32.partialorder %v142_v15, %v1590_v48 }
 0x178   :  { %1266 = vmatpush3.bf16.msra.mxu1 %v769_v35  ;;  %1231 = vmatprep.subr.bf16.mxu0 %v770_v38  ;;  %v1665_v35 = vsel %vm151_vm5, 1.0, %v1426_v4 }
 0x179   :  { %1259 = vmatprep.subr.bf16.mxu1 %v770_v38 }
 0x17b   :  { %1232 = vmatpush3.bf16.msra.mxu0 %v770_v38 }
 0x17c   :  { %1267 = vmatpush3.bf16.msra.mxu1 %v770_v38  ;;  %1233 = vmatprep.subr.bf16.mxu0 %v771_v44  ;;  %v138_v38 = vcvt.s32.f32 %v122_v24  ;;  %v143_v24 = vcvt.s32.f32 %v127_v60 }
 0x17d   :  { %1260 = vmatprep.subr.bf16.mxu1 %v771_v44 }
 0x17e   :  { %vm155_vm9 = vcmp.lt.f32.partialorder %v138_v38, %v1590_v48  ;;  %vm160_vm14 = vcmp.lt.f32.partialorder %v143_v24, %v1590_v48 }
 0x17f   :  { %1234 = vmatpush3.bf16.msra.mxu0 %v771_v44  ;;  %v1711_v3 = vsel %vm155_vm9, 1.0, %v1426_v4  ;;  %v1745_v52 = vsel %vm160_vm14, 1.0, %v1426_v4 }
 0x180   :  { %1268 = vmatpush3.bf16.msra.mxu1 %v771_v44  ;;  %1235 = vmatprep.subr.bf16.mxu0 %v772_v55  ;;  %v139_v44 = vcvt.s32.f32 %v123_v29  ;;  %v144_v29 = vcvt.s32.f32 %v128_v8 }
 0x181   :  { %1261 = vmatprep.subr.bf16.mxu1 %v772_v55 }
 0x182   :  { %vm1696_vm10 = vcmp.lt.f32.partialorder %v139_v44, %v1590_v48  ;;  %vm161_vm15 = vcmp.lt.f32.partialorder %v144_v29, %v1590_v48 }
 0x183   :  { %1236 = vmatpush3.bf16.msra.mxu0 %v772_v55  ;;  %v1721_v23 = vsel %vm1696_vm10, 1.0, %v1426_v4 }
 0x184   :  { %1269 = vmatpush3.bf16.msra.mxu1 %v772_v55  ;;  %1237 = vmatprep.subr.bf16.mxu0 %v773_v57 }
 0x185   :  { %1262 = vmatprep.subr.bf16.mxu1 %v773_v57 }
 0x187   :  { %1238 = vmatpush3.bf16.msra.mxu0 %v773_v57 }
 0x188   :  { %1270 = vmatpush3.bf16.msra.mxu1 %v773_v57  ;;  %v1750_v57 = vsel %vm161_vm15, 1.0, %v1426_v4 }
 0x22e   :  { %v1209_v58 = vpop.f32.mrb[0].mxu1 }
 0x22f   :  { %v447_v63 = vpop.f32.mrb[1].mxu1  ;;  %v1624_v10 = vadd.f32 %v1209_v58, %v1593_v53  ;;  %v1701_v58 = vsel %vm154_vm8, 1.0, %v1426_v4 }
 0x230   :  { %v1610_v1 = vadd.f32 %v447_v63, %v1593_v53  ;;  %v1210_v2 = vpop.f32.mrb[2].mxu1 }
 0x231   :  { %v450_v7 = vpop.f32.mrb[3].mxu1  ;;  %v1637_v20 = vadd.f32 %v1210_v2, %v1593_v53  ;;  %v512_v25 = vmul.f32 %v1631_v16, %v1624_v10  ;;  %v141_v2 = vcvt.s32.f32 %v125_v49 }
 0x232   :  { %v1628_v13 = vadd.f32 %v450_v7, %v1593_v53  ;;  %v510_v19 = vmul.f32 %v1615_v5, %v1610_v1 }
 0x233   :  { %v513_v14 = vmul.f32 %v1643_v22, %v1637_v20  ;;  %vm158_vm12 = vcmp.lt.f32.partialorder %v141_v2, %v1590_v48 }
 0x234   :  { %v511_v21 = vmul.f32 %v1620_v6, %v1628_v13 }
 0x236   :  { %v526_v26 = vadd.f32 %v511_v21, %v510_v19  ;;  %v1213_v27 = vpop.f32.mrb[4].mxu1 }
 0x237   :  { %v463_v12 = vpop.f32.mrb[5].mxu1  ;;  %v1669_v39 = vadd.f32 %v1213_v27, %v1593_v53 }
 0x238   :  { %v527_v31 = vadd.f32 %v526_v26, %v512_v25  ;;  %v1657_v32 = vadd.f32 %v463_v12, %v1593_v53  ;;  %v1214_v33 = vpop.f32.mrb[6].mxu1  ;;  %v1727_v12 = vsel %vm157_vm11, 1.0, %v1426_v4 }
 0x239   :  { %v466_v36 = vpop.f32.mrb[7].mxu1  ;;  %v1681_v46 = vadd.f32 %v1214_v33, %v1593_v53  ;;  %v516_v54 = vmul.f32 %v1677_v43, %v1669_v39  ;;  %v1732_v33 = vsel %vm158_vm12, 1.0, %v1426_v4 }
 0x23a   :  { %v514_v40 = vmul.f32 %v1650_v28, %v1657_v32  ;;  %v528_v41 = vadd.f32 %v527_v31, %v513_v14  ;;  %v1674_v42 = vadd.f32 %v466_v36, %v1593_v53 }
 0x23b   :  { %v517_v61 = vmul.f32 %v1689_v50, %v1681_v46 }
 0x23c   :  { %v529_v45 = vadd.f32 %v528_v41, %v514_v40  ;;  %v515_v47 = vmul.f32 %v1665_v35, %v1674_v42  ;;  %v1739_v41 = vsel %vm159_vm13, 1.0, %v1426_v4 }
 0x23e   :  { %v530_v55 = vadd.f32 %v529_v45, %v515_v47  ;;  %v1217_v56 = vpop.f32.mrb[8].mxu1 }
 0x23f   :  { %v479_v59 = vpop.f32.mrb[9].mxu1  ;;  %v488_v17 = vadd.f32 %v1217_v56, %v1593_v53 }
 0x240   :  { %v531_v62 = vadd.f32 %v530_v55, %v516_v54  ;;  %v1707_v63 = vadd.f32 %v479_v59, %v1593_v53  ;;  %v1218_v0 = vpop.f32.mrb[10].mxu1 }
 0x241   :  { %v482_v7 = vpop.f32.mrb[11].mxu1  ;;  %v491_v26 = vadd.f32 %v1218_v0, %v1593_v53  ;;  %v520_v30 = vmul.f32 %v1721_v23, %v488_v17 }
 0x242   :  { %v518_v18 = vmul.f32 %v1701_v58, %v1707_v63  ;;  %v532_v19 = vadd.f32 %v531_v62, %v517_v61  ;;  %v483_v21 = vadd.f32 %v482_v7, %v1593_v53 }
 0x243   :  { %v521_v36 = vmul.f32 %v1727_v12, %v491_v26 }
 0x244   :  { %v533_v25 = vadd.f32 %v532_v19, %v518_v18  ;;  %v519_v27 = vmul.f32 %v1711_v3, %v483_v21 }
 0x246   :  { %v534_v14 = vadd.f32 %v533_v25, %v519_v27  ;;  %v1221_v31 = vpop.f32.mrb[12].mxu1 }
 0x247   :  { %v495_v34 = vpop.f32.mrb[13].mxu1  ;;  %v504_v45 = vadd.f32 %v1221_v31, %v1593_v53 }
 0x248   :  { %v535_v37 = vadd.f32 %v534_v14, %v520_v30  ;;  %v496_v38 = vadd.f32 %v495_v34, %v1593_v53  ;;  %v1222_v40 = vpop.f32.mrb[14].mxu1 }
 0x249   :  { %v498_v44 = vpop.f32.mrb[15].mxu1  ;;  %v507_v55 = vadd.f32 %v1222_v40, %v1593_v53  ;;  %v524_v59 = vmul.f32 %v1745_v52, %v504_v45 }
 0x24a   :  { %v522_v47 = vmul.f32 %v1732_v33, %v496_v38  ;;  %v536_v49 = vadd.f32 %v535_v37, %v521_v36  ;;  %v499_v51 = vadd.f32 %v498_v44, %v1593_v53  ;;  %v1755_v53 = vpop.eup %1280 }
 0x24b   :  { %v525_v61 = vmul.f32 %v1750_v57, %v507_v55 }
 0x24c   :  { %v537_v54 = vadd.f32 %v536_v49, %v522_v47  ;;  %v523_v56 = vmul.f32 %v1739_v41, %v499_v51 }
 0x24e   :  { %v538_v60 = vadd.f32 %v537_v54, %v523_v56 }
 0x250   :  { %v539_v62 = vadd.f32 %v538_v60, %v524_v59 }
 0x252   :  { %v540_v0 = vadd.f32 %v539_v62, %v525_v61 }
 0x254   :  { %v541_v2 = vrot.slane %v540_v0, 4 }
 0x256   :  { %v542_v7 = vadd.f32 %v541_v2, %v540_v0 }
 0x258   :  { %v543_v8 = vrot.slane %v542_v7, 2 }
 0x25a   :  { %v544_v15 = vadd.f32 %v543_v8, %v542_v7 }
 0x25c   :  { %v545_v18 = vrot.slane %v544_v15, 1 }
 0x25e   :  { %v546_v19 = vadd.f32 %v545_v18, %v544_v15 }
 0x260   :  { %v548_v4 = vmul.f32 %v1755_v53, %v546_v19 }
 0x262   :  { %v1759_v24 = vsub.f32 %v1610_v1, %v548_v4  ;;  %v1762_v25 = vsub.f32 %v1628_v13, %v548_v4  ;;  %v1765_v27 = vsub.f32 %v1624_v10, %v548_v4  ;;  %v1768_v48 = vsub.f32 %v1637_v20, %v548_v4 }
 0x263   :  { %v1771_v29 = vsub.f32 %v1657_v32, %v548_v4  ;;  %v1774_v30 = vsub.f32 %v1674_v42, %v548_v4  ;;  %v1777_v14 = vsub.f32 %v1669_v39, %v548_v4  ;;  %v1780_v1 = vsub.f32 %v1681_v46, %v548_v4 }
 0x264   :  { %v1783_v13 = vsub.f32 %v1707_v63, %v548_v4  ;;  %v1785_v10 = vsub.f32 %v483_v21, %v548_v4  ;;  %v1787_v31 = vsub.f32 %v488_v17, %v548_v4  ;;  %v1789_v20 = vsub.f32 %v491_v26, %v548_v4 }
 0x265   :  { %v1791_v32 = vsub.f32 %v496_v38, %v548_v4  ;;  %v1793_v34 = vsub.f32 %v499_v51, %v548_v4  ;;  %v1795_v42 = vsub.f32 %v504_v45, %v548_v4  ;;  %v1797_v39 = vsub.f32 %v507_v55, %v548_v4 }
 0x266   :  { %v565_v46 = vmul.f32 %v1759_v24, %v1759_v24  ;;  %v566_v63 = vmul.f32 %v1762_v25, %v1762_v25  ;;  %v567_v17 = vmul.f32 %v1765_v27, %v1765_v27  ;;  %v568_v36 = vmul.f32 %v1768_v48, %v1768_v48 }
 0x267   :  { %v569_v37 = vmul.f32 %v1771_v29, %v1771_v29  ;;  %v570_v44 = vmul.f32 %v1774_v30, %v1774_v30  ;;  %v571_v49 = vmul.f32 %v1777_v14, %v1777_v14  ;;  %v572_v55 = vmul.f32 %v1780_v1, %v1780_v1 }
 0x268   :  { %v581_v21 = vmul.f32 %v1615_v5, %v565_v46  ;;  %v582_v26 = vmul.f32 %v1620_v6, %v566_v63  ;;  %v583_v38 = vmul.f32 %v1631_v16, %v567_v17  ;;  %v584_v45 = vmul.f32 %v1643_v22, %v568_v36 }
 0x269   :  { %v585_v51 = vmul.f32 %v1650_v28, %v569_v37  ;;  %v586_v56 = vmul.f32 %v1665_v35, %v570_v44  ;;  %v573_v60 = vmul.f32 %v1783_v13, %v1783_v13  ;;  %v587_v61 = vmul.f32 %v1677_v43, %v571_v49 }
 0x26a   :  { %v597_v40 = vadd.f32 %v582_v26, %v581_v21  ;;  %v574_v0 = vmul.f32 %v1785_v10, %v1785_v10  ;;  %v588_v2 = vmul.f32 %v1689_v50, %v572_v55  ;;  %v575_v8 = vmul.f32 %v1787_v31, %v1787_v31 }
 0x26b   :  { %v589_v15 = vmul.f32 %v1701_v58, %v573_v60  ;;  %v576_v19 = vmul.f32 %v1789_v20, %v1789_v20  ;;  %v577_v63 = vmul.f32 %v1791_v32, %v1791_v32  ;;  %v578_v26 = vmul.f32 %v1793_v34, %v1793_v34 }
 0x26c   :  { %v598_v47 = vadd.f32 %v597_v40, %v583_v38  ;;  %v590_v4 = vmul.f32 %v1711_v3, %v574_v0  ;;  %v591_v17 = vmul.f32 %v1721_v23, %v575_v8  ;;  %v579_v38 = vmul.f32 %v1795_v42, %v1795_v42 }
 0x26d   :  { %v592_v36 = vmul.f32 %v1727_v12, %v576_v19  ;;  %v593_v40 = vmul.f32 %v1732_v33, %v577_v63  ;;  %v659_v19 = vsub.s32 4, %v1540_v9 }
 0x26e   :  { %v599_v54 = vadd.f32 %v598_v47, %v584_v45  ;;  %v580_v45 = vmul.f32 %v1797_v39, %v1797_v39  ;;  %v594_v47 = vmul.f32 %v1739_v41, %v578_v26 }
 0x26f   :  { %v1856_v63 = vrot.slane %v1546_v11, %v659_v19 }
 0x270   :  { %v600_v59 = vadd.f32 %v599_v54, %v585_v51  ;;  %v595_v51 = vmul.f32 %v1745_v52, %v579_v38  ;;  %v596_v55 = vmul.f32 %v1750_v57, %v580_v45 }
 0x272   :  { %v601_v62 = vadd.f32 %v600_v59, %v586_v56 }
 0x274   :  { %v602_v7 = vadd.f32 %v601_v62, %v587_v61 }
 0x276   :  { %v603_v18 = vadd.f32 %v602_v7, %v588_v2 }
 0x278   :  { %v604_v46 = vadd.f32 %v603_v18, %v589_v15  ;;  %v639_v18 = vsub.s32 3, %v1540_v9 }
 0x27a   :  { %v605_v21 = vadd.f32 %v604_v46, %v590_v4  ;;  %v1851_v4 = vrot.slane %v1546_v11, %v639_v18 }
 0x27c   :  { %v606_v37 = vadd.f32 %v605_v21, %v591_v17  ;;  %v1858_v17 = vstv %s1094_s29 }
 0x27e   :  { %v607_v44 = vadd.f32 %v606_v37, %v592_v36 }
 0x280   :  { %v608_v49 = vadd.f32 %v607_v44, %v593_v40 }
 0x282   :  { %v609_v54 = vadd.f32 %v608_v49, %v594_v47 }
 0x284   :  { %v610_v56 = vadd.f32 %v609_v54, %v595_v51 }
 0x286   :  { %v611_v59 = vadd.f32 %v610_v56, %v596_v55 }
 0x288   :  { %v612_v60 = vrot.slane %v611_v59, 4 }
 0x28a   :  { %v613_v61 = vadd.f32 %v612_v60, %v611_v59 }
 0x28c   :  { %v614_v62 = vrot.slane %v613_v61, 2 }
 0x28e   :  { %v615_v0 = vadd.f32 %v614_v62, %v613_v61 }
 0x290   :  { %v616_v2 = vrot.slane %v615_v0, 1 }
 0x292   :  { %v617_v7 = vadd.f32 %v616_v2, %v615_v0 }
 0x294   :  { %v618_v8 = vmul.f32 %v1755_v53, %v617_v7 }
 0x296   :  { %v619_v15 = vadd.f32 1e-05, %v618_v8 }
 0x298   :  { %1282 = vrsqrt.f32 %v619_v15 }
 0x2a2   :  { %v1853_v46 = vpop.eup %1282 }
 0x2a3   :  { %v631_v21 = vmul.f32 %v1853_v46, %v1787_v31  ;;  %v632_v26 = vmul.f32 %v1853_v46, %v1789_v20  ;;  %v634_v36 = vmul.f32 %v1853_v46, %v1793_v34  ;;  %v621_v37 = vmul.f32 %v1853_v46, %v1759_v24 }
 0x2a4   :  { %v622_v38 = vmul.f32 %v1853_v46, %v1762_v25  ;;  %v629_v40 = vmul.f32 %v1853_v46, %v1783_v13  ;;  %v630_v44 = vmul.f32 %v1853_v46, %v1785_v10  ;;  %v623_v31 = vmul.f32 %v1853_v46, %v1765_v27 }
 0x2a5   :  { %v654_v20 = vmul.f32 %v1851_v4, %v634_v36  ;;  %v641_v45 = vmul.f32 %v1851_v4, %v621_v37  ;;  %v624_v34 = vmul.f32 %v1853_v46, %v1768_v48  ;;  %v651_v24 = vmul.f32 %v1851_v4, %v631_v21 }
 0x2a6   :  { %v642_v25 = vmul.f32 %v1851_v4, %v622_v38  ;;  %v649_v47 = vmul.f32 %v1851_v4, %v629_v40  ;;  %v650_v13 = vmul.f32 %v1851_v4, %v630_v44  ;;  %v643_v10 = vmul.f32 %v1851_v4, %v623_v31 }
 0x2a7   :  { %v674_v49 = vadd.f32 %v1856_v63, %v654_v20  ;;  %v661_v27 = vadd.f32 %v1856_v63, %v641_v45  ;;  %v644_v51 = vmul.f32 %v1851_v4, %v624_v34  ;;  %v652_v54 = vmul.f32 %v1851_v4, %v632_v26 }
 0x2a8   :  { %v662_v48 = vadd.f32 %v1856_v63, %v642_v25  ;;  %v669_v55 = vadd.f32 %v1856_v63, %v649_v47  ;;  %v670_v56 = vadd.f32 %v1856_v63, %v650_v13  ;;  %v663_v59 = vadd.f32 %v1856_v63, %v643_v10 }
 0x2a9   :  { %v677_v60 = vmul.f32 %v1615_v5, %v661_v27  ;;  %v664_v61 = vadd.f32 %v1856_v63, %v644_v51  ;;  %v671_v62 = vadd.f32 %v1856_v63, %v651_v24  ;;  %v672_v0 = vadd.f32 %v1856_v63, %v652_v54 }
 0x2aa   :  { %v678_v2 = vmul.f32 %v1620_v6, %v662_v48  ;;  %v685_v7 = vmul.f32 %v1701_v58, %v669_v55  ;;  %v686_v8 = vmul.f32 %v1711_v3, %v670_v56  ;;  %v679_v15 = vmul.f32 %v1631_v16, %v663_v59 }
 0x2ab   :  { %vm693_vm0 = vcmp.gt.f32.partialorder %v677_v60, 0.0  ;;  %v710_v18 = vmul.f32 %v1858_v17, %v677_v60  ;;  %v680_v19 = vmul.f32 %v1643_v22, %v664_v61  ;;  %v687_v21 = vmul.f32 %v1721_v23, %v671_v62 }
 0x2ac   :  { %vm694_vm1 = vcmp.gt.f32.partialorder %v678_v2, 0.0  ;;  %v711_v26 = vmul.f32 %v1858_v17, %v678_v2  ;;  %vm701_vm2 = vcmp.gt.f32.partialorder %v685_v7, 0.0  ;;  %vm702_vm3 = vcmp.gt.f32.partialorder %v686_v8, 0.0 }
 0x2ad   :  { %v726_v36 = vsel %vm693_vm0, %v677_v60, %v710_v18  ;;  %v718_v37 = vmul.f32 %v1858_v17, %v685_v7  ;;  %v719_v38 = vmul.f32 %v1858_v17, %v686_v8  ;;  %vm695_vm4 = vcmp.gt.f32.partialorder %v679_v15, 0.0 }
 0x2ae   :  { %v727_v40 = vsel %vm694_vm1, %v678_v2, %v711_v26  ;;  %vm696_vm5 = vcmp.gt.f32.partialorder %v680_v19, 0.0  ;;  %v712_v44 = vmul.f32 %v1858_v17, %v679_v15  ;;  %v713_v31 = vmul.f32 %v1858_v17, %v680_v19 }
 0x2af   :  { %v758_v20 = vpack.c.bf16 %v727_v40, %v726_v36  ;;  %v734_v45 = vsel %vm701_vm2, %v685_v7, %v718_v37  ;;  %v735_v34 = vsel %vm702_vm3, %v686_v8, %v719_v38  ;;  %v688_v24 = vmul.f32 %v1727_v12, %v672_v0 }
 0x2b0   :  { %v762_v25 = vpack.c.bf16 %v735_v34, %v734_v45  ;;  %v728_v47 = vsel %vm695_vm4, %v679_v15, %v712_v44  ;;  %v729_v13 = vsel %vm696_vm5, %v680_v19, %v713_v31  ;;  %vm703_vm6 = vcmp.gt.f32.partialorder %v687_v21, 0.0 }
 0x2b1   :  { %1239 = vmatprep.mubr.bf16.mxu0 %v758_v20  ;;  %v759_v10 = vpack.c.bf16 %v729_v13, %v728_v47  ;;  %vm704_vm7 = vcmp.gt.f32.partialorder %v688_v24, 0.0  ;;  %v720_v27 = vmul.f32 %v1858_v17, %v687_v21  ;;  %v721_v51 = vmul.f32 %v1858_v17, %v688_v24 }
 0x2b2   :  { %1247 = vmatprep.mubr.bf16.mxu1 %v762_v25  ;;  %v625_v54 = vmul.f32 %v1853_v46, %v1771_v29  ;;  %v626_v48 = vmul.f32 %v1853_v46, %v1774_v30  ;;  %v633_v55 = vmul.f32 %v1853_v46, %v1791_v32  ;;  %v690_v56 = vmul.f32 %v1739_v41, %v674_v49 }
 0x2b3   :  { %1240 = vmatmul.mubr.bf16.vlgmr.msra.gmra.mrb[16].mxu0 %v759_v10  ;;  %v736_v59 = vsel %vm703_vm6, %v687_v21, %v720_v27  ;;  %v737_v60 = vsel %vm704_vm7, %v688_v24, %v721_v51  ;;  %v627_v61 = vmul.f32 %v1853_v46, %v1777_v14  ;;  %v628_v62 = vmul.f32 %v1853_v46, %v1780_v1 }
 0x2b4   :  { %v763_v0 = vpack.c.bf16 %v737_v60, %v736_v59  ;;  %v645_v29 = vmul.f32 %v1851_v4, %v625_v54  ;;  %v646_v2 = vmul.f32 %v1851_v4, %v626_v48  ;;  %v653_v30 = vmul.f32 %v1851_v4, %v633_v55 }
 0x2b5   :  { %vm706_vm8 = vcmp.gt.f32.partialorder %v690_v56, 0.0  ;;  %v723_v32 = vmul.f32 %v1858_v17, %v690_v56  ;;  %v647_v49 = vmul.f32 %v1851_v4, %v627_v61  ;;  %v648_v7 = vmul.f32 %v1851_v4, %v628_v62 }
 0x2b6   :  { %1248 = vmatmul.mubr.bf16.vlgmr.msra.gmra.mrb[16].mxu1 %v763_v0  ;;  %v665_v14 = vadd.f32 %v1856_v63, %v645_v29  ;;  %v666_v8 = vadd.f32 %v1856_v63, %v646_v2  ;;  %v673_v1 = vadd.f32 %v1856_v63, %v653_v30  ;;  %v635_v15 = vmul.f32 %v1853_v46, %v1795_v42 }
 0x2b7   :  { %v667_v18 = vadd.f32 %v1856_v63, %v647_v49  ;;  %v668_v19 = vadd.f32 %v1856_v63, %v648_v7  ;;  %v636_v21 = vmul.f32 %v1853_v46, %v1797_v39  ;;  %v739_v38 = vsel %vm706_vm8, %v690_v56, %v723_v32 }
 0x2b8   :  { %v681_v26 = vmul.f32 %v1650_v28, %v665_v14  ;;  %v682_v36 = vmul.f32 %v1665_v35, %v666_v8  ;;  %v689_v37 = vmul.f32 %v1732_v33, %v673_v1  ;;  %v655_v42 = vmul.f32 %v1851_v4, %v635_v15 }
 0x2b9   :  { %v683_v40 = vmul.f32 %v1677_v43, %v667_v18  ;;  %v684_v44 = vmul.f32 %v1689_v50, %v668_v19  ;;  %v656_v31 = vmul.f32 %v1851_v4, %v636_v21  ;;  %v776_v0 = vsub.s32 2, %v1540_v9 }
 0x2ba   :  { %vm697_vm9 = vcmp.gt.f32.partialorder %v681_v26, 0.0  ;;  %vm698_vm10 = vcmp.gt.f32.partialorder %v682_v36, 0.0  ;;  %v714_v20 = vmul.f32 %v1858_v17, %v681_v26  ;;  %v715_v39 = vmul.f32 %v1858_v17, %v682_v36 }
 0x2bb   :  { %vm705_vm11 = vcmp.gt.f32.partialorder %v689_v37, 0.0  ;;  %v722_v46 = vmul.f32 %v1858_v17, %v689_v37  ;;  %vm699_vm12 = vcmp.gt.f32.partialorder %v683_v40, 0.0  ;;  %vm700_vm13 = vcmp.gt.f32.partialorder %v684_v44, 0.0 }
 0x2bc   :  { %v730_v45 = vsel %vm697_vm9, %v681_v26, %v714_v20  ;;  %v731_v34 = vsel %vm698_vm10, %v682_v36, %v715_v39  ;;  %v716_v24 = vmul.f32 %v1858_v17, %v683_v40  ;;  %v717_v25 = vmul.f32 %v1858_v17, %v684_v44 }
 0x2bd   :  { %v760_v47 = vpack.c.bf16 %v731_v34, %v730_v45  ;;  %v738_v13 = vsel %vm705_vm11, %v689_v37, %v722_v46  ;;  %v675_v4 = vadd.f32 %v1856_v63, %v655_v42  ;;  %v676_v10 = vadd.f32 %v1856_v63, %v656_v31 }
 0x2be   :  { %v764_v27 = vpack.c.bf16 %v739_v38, %v738_v13  ;;  %v732_v51 = vsel %vm699_vm12, %v683_v40, %v716_v24  ;;  %v733_v54 = vsel %vm700_vm13, %v684_v44, %v717_v25  ;;  %v777_v29 = vrot.slane %v1546_v11, %v776_v0 }
 0x2bf   :  { %1243 = vmatprep.mubr.bf16.mxu0 %v760_v47  ;;  %v761_v48 = vpack.c.bf16 %v733_v54, %v732_v51  ;;  %v691_v55 = vmul.f32 %v1745_v52, %v675_v4  ;;  %v692_v56 = vmul.f32 %v1750_v57, %v676_v10 }
 0x2c0   :  { %1251 = vmatprep.mubr.bf16.mxu1 %v764_v27 }
 0x2c1   :  { %1244 = vmatmul.mubr.bf16.gmra.mrb[20].mxu0 %v761_v48  ;;  %vm707_vm14 = vcmp.gt.f32.partialorder %v691_v55, 0.0  ;;  %vm708_vm15 = vcmp.gt.f32.partialorder %v692_v56, 0.0  ;;  %v724_v59 = vmul.f32 %v1858_v17, %v691_v55  ;;  %v725_v60 = vmul.f32 %v1858_v17, %v692_v56 }
 0x2c3   :  { %v740_v61 = vsel %vm707_vm14, %v691_v55, %v724_v59  ;;  %v741_v62 = vsel %vm708_vm15, %v692_v56, %v725_v60 }
 0x2c4   :  { %v765_v63 = vpack.c.bf16 %v741_v62, %v740_v61 }
 0x2c6   :  { %1252 = vmatmul.mubr.bf16.gmra.mrb[20].mxu1 %v765_v63 }
 0x386   :  { %v1241_v2 = vpop.f32.mrb[16].mxu0 }
 0x387   :  { %v812_v30 = vpop.f32.mrb[17].mxu0  ;;  %v1960_v8 = vadd.f32 %v1241_v2, %v777_v29 }
 0x388   :  { %v1958_v32 = vadd.f32 %v812_v30, %v777_v29  ;;  %v1242_v49 = vpop.f32.mrb[18].mxu0 }
 0x389   :  { %v1249_v7 = vpop.f32.mrb[16].mxu1  ;;  %v815_v14 = vpop.f32.mrb[19].mxu0  ;;  %v824_v19 = vadd.f32 %v1242_v49, %v777_v29  ;;  %v877_v26 = vmul.f32 %v1631_v16, %v1960_v8 }
 0x38a   :  { %v844_v1 = vpop.f32.mrb[17].mxu1  ;;  %v1962_v15 = vadd.f32 %v815_v14, %v777_v29  ;;  %v875_v18 = vmul.f32 %v1615_v5, %v1958_v32  ;;  %v853_v60 = vadd.f32 %v1249_v7, %v777_v29 }
 0x38b   :  { %v1250_v17 = vpop.f32.mrb[18].mxu1  ;;  %v878_v37 = vmul.f32 %v1643_v22, %v824_v19  ;;  %v845_v27 = vadd.f32 %v844_v1, %v777_v29 }
 0x38c   :  { %v876_v11 = vmul.f32 %v1620_v6, %v1962_v15  ;;  %v847_v21 = vpop.f32.mrb[19].mxu1  ;;  %v856_v63 = vadd.f32 %v1250_v17, %v777_v29  ;;  %v885_v30 = vmul.f32 %v1721_v23, %v853_v60 }
 0x38d   :  { %v848_v55 = vadd.f32 %v847_v21, %v777_v29  ;;  %v883_v61 = vmul.f32 %v1701_v58, %v845_v27 }
 0x38e   :  { %v891_v36 = vadd.f32 %v876_v11, %v875_v18  ;;  %v886_v1 = vmul.f32 %v1727_v12, %v856_v63 }
 0x38f   :  { %v884_v0 = vmul.f32 %v1711_v3, %v848_v55 }
 0x390   :  { %v892_v38 = vadd.f32 %v891_v36, %v877_v26 }
 0x392   :  { %v893_v40 = vadd.f32 %v892_v38, %v878_v37 }
 0x394   :  { %v1245_v44 = vpop.f32.mrb[20].mxu0 }
 0x395   :  { %v828_v42 = vpop.f32.mrb[21].mxu0  ;;  %v837_v46 = vadd.f32 %v1245_v44, %v777_v29 }
 0x396   :  { %v829_v31 = vadd.f32 %v828_v42, %v777_v29  ;;  %v1246_v20 = vpop.f32.mrb[22].mxu0 }
 0x397   :  { %v831_v39 = vpop.f32.mrb[23].mxu0  ;;  %v840_v13 = vadd.f32 %v1246_v20, %v777_v29  ;;  %v881_v51 = vmul.f32 %v1677_v43, %v837_v46 }
 0x398   :  { %v879_v45 = vmul.f32 %v1650_v28, %v829_v31  ;;  %v832_v34 = vadd.f32 %v831_v39, %v777_v29 }
 0x399   :  { %v1253_v24 = vpop.f32.mrb[20].mxu1  ;;  %v882_v56 = vmul.f32 %v1689_v50, %v840_v13 }
 0x39a   :  { %v894_v25 = vadd.f32 %v893_v40, %v879_v45  ;;  %v860_v47 = vpop.f32.mrb[21].mxu1  ;;  %v880_v4 = vmul.f32 %v1665_v35, %v832_v34  ;;  %v869_v21 = vadd.f32 %v1253_v24, %v777_v29 }
 0x39b   :  { %v1254_v10 = vpop.f32.mrb[22].mxu1  ;;  %v861_v49 = vadd.f32 %v860_v47, %v777_v29 }
 0x39c   :  { %v895_v54 = vadd.f32 %v894_v25, %v880_v4  ;;  %v863_v48 = vpop.f32.mrb[23].mxu1  ;;  %v872_v7 = vadd.f32 %v1254_v10, %v777_v29  ;;  %v889_v17 = vmul.f32 %v1745_v52, %v869_v21 }
 0x39d   :  { %v864_v18 = vadd.f32 %v863_v48, %v777_v29  ;;  %v887_v26 = vmul.f32 %v1732_v33, %v861_v49 }
 0x39e   :  { %v896_v59 = vadd.f32 %v895_v54, %v881_v51  ;;  %v890_v44 = vmul.f32 %v1750_v57, %v872_v7 }
 0x39f   :  { %v888_v37 = vmul.f32 %v1739_v41, %v864_v18 }
 0x3a0   :  { %v897_v62 = vadd.f32 %v896_v59, %v882_v56 }
 0x3a2   :  { %v898_v2 = vadd.f32 %v897_v62, %v883_v61 }
 0x3a4   :  { %v899_v14 = vadd.f32 %v898_v2, %v884_v0 }
 0x3a6   :  { %v900_v11 = vadd.f32 %v899_v14, %v885_v30 }
 0x3a8   :  { %v901_v36 = vadd.f32 %v900_v11, %v886_v1 }
 0x3aa   :  { %v902_v38 = vadd.f32 %v901_v36, %v887_v26 }
 0x3ac   :  { %v903_v40 = vadd.f32 %v902_v38, %v888_v37 }
 0x3ae   :  { %v904_v42 = vadd.f32 %v903_v40, %v889_v17 }
 0x3b0   :  { %v905_v20 = vadd.f32 %v904_v42, %v890_v44 }
 0x3b2   :  { %v906_v39 = vrot.slane %v905_v20, 4 }
 0x3b4   :  { %v907_v45 = vadd.f32 %v906_v39, %v905_v20 }
 0x3b6   :  { %v908_v25 = vrot.slane %v907_v45, 2 }
 0x3b8   :  { %v909_v47 = vadd.f32 %v908_v25, %v907_v45 }
 0x3ba   :  { %v910_v4 = vrot.slane %v909_v47, 1 }
 0x3bc   :  { %v911_v24 = vadd.f32 %v910_v4, %v909_v47 }
 0x3be   :  { %v912_v51 = vmul.f32 %v1755_v53, %v911_v24 }
 0x3c0   :  { %v1985_v29 = vsub.f32 %v1958_v32, %v912_v51  ;;  %v1988_v10 = vsub.f32 %v1962_v15, %v912_v51  ;;  %v1991_v54 = vsub.f32 %v1960_v8, %v912_v51  ;;  %v1993_v48 = vsub.f32 %v824_v19, %v912_v51 }
 0x3c1   :  { %v1995_v56 = vsub.f32 %v829_v31, %v912_v51  ;;  %v1997_v59 = vsub.f32 %v832_v34, %v912_v51  ;;  %v1999_v61 = vsub.f32 %v837_v46, %v912_v51  ;;  %v2001_v62 = vsub.f32 %v840_v13, %v912_v51 }
 0x3c2   :  { %v2003_v0 = vsub.f32 %v845_v27, %v912_v51  ;;  %v2005_v32 = vsub.f32 %v848_v55, %v912_v51  ;;  %v2007_v2 = vsub.f32 %v853_v60, %v912_v51  ;;  %v2009_v15 = vsub.f32 %v856_v63, %v912_v51 }
 0x3c3   :  { %v2011_v8 = vsub.f32 %v861_v49, %v912_v51  ;;  %v2013_v19 = vsub.f32 %v864_v18, %v912_v51  ;;  %v2015_v31 = vsub.f32 %v869_v21, %v912_v51  ;;  %v2017_v34 = vsub.f32 %v872_v7, %v912_v51 }
 0x3c4   :  { %v929_v46 = vmul.f32 %v1985_v29, %v1985_v29  ;;  %v930_v13 = vmul.f32 %v1988_v10, %v1988_v10  ;;  %v931_v27 = vmul.f32 %v1991_v54, %v1991_v54  ;;  %v932_v63 = vmul.f32 %v1993_v48, %v1993_v48 }
 0x3c5   :  { %v933_v30 = vmul.f32 %v1995_v56, %v1995_v56  ;;  %v934_v1 = vmul.f32 %v1997_v59, %v1997_v59  ;;  %v935_v21 = vmul.f32 %v1999_v61, %v1999_v61  ;;  %v936_v7 = vmul.f32 %v2001_v62, %v2001_v62 }
 0x3c6   :  { %v945_v55 = vmul.f32 %v1615_v5, %v929_v46  ;;  %v946_v60 = vmul.f32 %v1620_v6, %v930_v13  ;;  %v947_v49 = vmul.f32 %v1631_v16, %v931_v27  ;;  %v948_v18 = vmul.f32 %v1643_v22, %v932_v63 }
 0x3c7   :  { %v949_v26 = vmul.f32 %v1650_v28, %v933_v30  ;;  %v950_v37 = vmul.f32 %v1665_v35, %v934_v1  ;;  %v937_v17 = vmul.f32 %v2003_v0, %v2003_v0  ;;  %v951_v40 = vmul.f32 %v1677_v43, %v935_v21 }
 0x3c8   :  { %v961_v14 = vadd.f32 %v946_v60, %v945_v55  ;;  %v938_v42 = vmul.f32 %v2005_v32, %v2005_v32  ;;  %v952_v20 = vmul.f32 %v1689_v50, %v936_v7  ;;  %v939_v45 = vmul.f32 %v2007_v2, %v2007_v2 }
 0x3c9   :  { %v953_v25 = vmul.f32 %v1701_v58, %v937_v17  ;;  %v940_v4 = vmul.f32 %v2009_v15, %v2009_v15  ;;  %v941_v46 = vmul.f32 %v2011_v8, %v2011_v8  ;;  %v942_v55 = vmul.f32 %v2013_v19, %v2013_v19 }
 0x3ca   :  { %v962_v11 = vadd.f32 %v961_v14, %v947_v49  ;;  %v954_v24 = vmul.f32 %v1711_v3, %v938_v42  ;;  %v955_v13 = vmul.f32 %v1721_v23, %v939_v45  ;;  %v943_v30 = vmul.f32 %v2015_v31, %v2015_v31 }
 0x3cb   :  { %v956_v60 = vmul.f32 %v1727_v12, %v940_v4  ;;  %v957_v49 = vmul.f32 %v1732_v33, %v941_v46  ;;  %v944_v1 = vmul.f32 %v2017_v34, %v2017_v34 }
 0x3cc   :  { %v963_v36 = vadd.f32 %v962_v11, %v948_v18  ;;  %v958_v18 = vmul.f32 %v1739_v41, %v942_v55  ;;  %v959_v21 = vmul.f32 %v1745_v52, %v943_v30 }
 0x3ce   :  { %v964_v38 = vadd.f32 %v963_v36, %v949_v26  ;;  %v960_v36 = vmul.f32 %v1750_v57, %v944_v1 }
 0x3d0   :  { %v965_v44 = vadd.f32 %v964_v38, %v950_v37 }
 0x3d2   :  { %v966_v39 = vadd.f32 %v965_v44, %v951_v40 }
 0x3d4   :  { %v967_v47 = vadd.f32 %v966_v39, %v952_v20 }
 0x3d6   :  { %v968_v51 = vadd.f32 %v967_v47, %v953_v25  ;;  %v1003_v25 = vsub.s32 5, %v1540_v9  ;;  %v1023_v47 = vsub.s32 6, %v1540_v9 }
 0x3d8   :  { %v969_v27 = vadd.f32 %v968_v51, %v954_v24  ;;  %v1286_v24 = vld [vmem:[%s2124_s4] sm:$0xff]  ;;  %s1427_s4 = smov [#allocation12]  }
 0x3d9   :  { %v1004_v51 = vrot.slane %v1286_v24, %v1003_v25  ;;  %v1024_v46 = vrot.slane %v1286_v24, %v1023_v47  ;;  %s1078_s8 = sshll.u32 %s1427_s4, 4  ;;  %s1079_s8 = int_to_ptr.vmem [resolvable:$true] %s1078_s8 }
 0x3da   :  { %v970_v63 = vadd.f32 %v969_v27, %v955_v13  ;;  %s1387_s11 = scalar_lea.vmem %s1079_s8, 2048  ;;  %p1392_p10 = scmp.lt.s32.totalorder %s1079_s8, %s1079_s8 }
 0x3db   :  { %p1388_p9 = scmp.ne.s32.totalorder %s1079_s8, %s1387_s11  ;;  %p1393_p11 = scmp.lt.s32.totalorder %s1387_s11, %s1387_s11 }
 0x3dc   :  { %v971_v14 = vadd.f32 %v970_v63, %v956_v60 }
 0x3dd   :  { %p1394_p12 = por %p1393_p11, %p1392_p10 }
 0x3de   :  { %v972_v11 = vadd.f32 %v971_v14, %v957_v49 }
 0x3df   :  { %p1395_p13 = pnand %p1394_p12, %p1388_p9 }
 0x3e0   :  { %v973_v26 = vadd.f32 %v972_v11, %v958_v18 }
 0x3e2   :  { %v974_v7 = vadd.f32 %v973_v26, %v959_v21 }
 0x3e4   :  { %v975_v37 = vadd.f32 %v974_v7, %v960_v36 }
 0x3e6   :  { %v976_v38 = vrot.slane %v975_v37, 4 }
 0x3e8   :  { %v977_v17 = vadd.f32 %v976_v38, %v975_v37 }
 0x3ea   :  { %v978_v40 = vrot.slane %v977_v17, 2 }
 0x3ec   :  { %v979_v44 = vadd.f32 %v978_v40, %v977_v17 }
 0x3ee   :  { %v980_v42 = vrot.slane %v979_v44, 1 }
 0x3f0   :  { %v981_v20 = vadd.f32 %v980_v42, %v979_v44 }
 0x3f2   :  { %v982_v39 = vmul.f32 %v1755_v53, %v981_v20 }
 0x3f4   :  { %v983_v45 = vadd.f32 1e-05, %v982_v39 }
 0x3f6   :  { %1284 = vrsqrt.f32 %v983_v45 }
 0x400   :  { %v1285_v4 = vpop.eup %1284 }
 0x401   :  { %v985_v13 = vmul.f32 %v1285_v4, %v1985_v29  ;;  %v986_v27 = vmul.f32 %v1285_v4, %v1988_v10  ;;  %v987_v55 = vmul.f32 %v1285_v4, %v1991_v54  ;;  %v988_v53 = vmul.f32 %v1285_v4, %v1993_v48 }
 0x402   :  { %v989_v60 = vmul.f32 %v1285_v4, %v1995_v56  ;;  %v990_v63 = vmul.f32 %v1285_v4, %v1997_v59  ;;  %v991_v9 = vmul.f32 %v1285_v4, %v1999_v61  ;;  %v992_v30 = vmul.f32 %v1285_v4, %v2001_v62 }
 0x403   :  { %v993_v49 = vmul.f32 %v1285_v4, %v2003_v0  ;;  %v994_v14 = vmul.f32 %v1285_v4, %v2005_v32  ;;  %v995_v29 = vmul.f32 %v1285_v4, %v2007_v2  ;;  %v996_v10 = vmul.f32 %v1285_v4, %v2009_v15 }
 0x404   :  { %v997_v54 = vmul.f32 %v1285_v4, %v2011_v8  ;;  %v998_v48 = vmul.f32 %v1285_v4, %v2013_v19  ;;  %v999_v56 = vmul.f32 %v1285_v4, %v2015_v31  ;;  %v1000_v59 = vmul.f32 %v1285_v4, %v2017_v34 }
 0x405   :  { %v1005_v1 = vmul.f32 %v1004_v51, %v985_v13  ;;  %v1006_v61 = vmul.f32 %v1004_v51, %v986_v27  ;;  %v1007_v18 = vmul.f32 %v1004_v51, %v987_v55  ;;  %v1008_v62 = vmul.f32 %v1004_v51, %v988_v53 }
 0x406   :  { %v1009_v11 = vmul.f32 %v1004_v51, %v989_v60  ;;  %v1010_v0 = vmul.f32 %v1004_v51, %v990_v63  ;;  %v1011_v21 = vmul.f32 %v1004_v51, %v991_v9  ;;  %v1012_v32 = vmul.f32 %v1004_v51, %v992_v30 }
 0x407   :  { %v1013_v26 = vmul.f32 %v1004_v51, %v993_v49  ;;  %v1014_v2 = vmul.f32 %v1004_v51, %v994_v14  ;;  %v1015_v36 = vmul.f32 %v1004_v51, %v995_v29  ;;  %v1016_v15 = vmul.f32 %v1004_v51, %v996_v10 }
 0x408   :  { %v1017_v7 = vmul.f32 %v1004_v51, %v997_v54  ;;  %v1018_v8 = vmul.f32 %v1004_v51, %v998_v48  ;;  %v1019_v37 = vmul.f32 %v1004_v51, %v999_v56  ;;  %v1020_v19 = vmul.f32 %v1004_v51, %v1000_v59 }
 0x409   :  { %v1025_v38 = vadd.f32 %v1024_v46, %v1005_v1  ;;  %v1026_v31 = vadd.f32 %v1024_v46, %v1006_v61  ;;  %v1027_v17 = vadd.f32 %v1024_v46, %v1007_v18  ;;  %v1028_v34 = vadd.f32 %v1024_v46, %v1008_v62 }
 0x40a   :  { %v1029_v40 = vadd.f32 %v1024_v46, %v1009_v11  ;;  %v1030_v44 = vadd.f32 %v1024_v46, %v1010_v0  ;;  %v1031_v42 = vadd.f32 %v1024_v46, %v1011_v21  ;;  %v1032_v20 = vadd.f32 %v1024_v46, %v1012_v32 }
 0x40b   :  { %v1033_v39 = vadd.f32 %v1024_v46, %v1013_v26  ;;  %v1034_v45 = vadd.f32 %v1024_v46, %v1014_v2  ;;  %v1035_v25 = vadd.f32 %v1024_v46, %v1015_v36  ;;  %v1036_v47 = vadd.f32 %v1024_v46, %v1016_v15 }
 0x40c   :  { %v1037_v4 = vadd.f32 %v1024_v46, %v1017_v7  ;;  %v1038_v24 = vadd.f32 %v1024_v46, %v1018_v8  ;;  %v1039_v13 = vadd.f32 %v1024_v46, %v1019_v37  ;;  %v1040_v27 = vadd.f32 %v1024_v46, %v1020_v19 }
 0x40d   :  { %v1041_v55 = vmul.f32 %v1615_v5, %v1025_v38  ;;  %v1042_v51 = vmul.f32 %v1620_v6, %v1026_v31  ;;  %v1043_v53 = vmul.f32 %v1631_v16, %v1027_v17  ;;  %v1044_v60 = vmul.f32 %v1643_v22, %v1028_v34 }
 0x40e   :  { %v1045_v63 = vmul.f32 %v1650_v28, %v1029_v40  ;;  %v1046_v9 = vmul.f32 %v1665_v35, %v1030_v44  ;;  %v1047_v30 = vmul.f32 %v1677_v43, %v1031_v42  ;;  %v1048_v49 = vmul.f32 %v1689_v50, %v1032_v20 }
 0x40f   :  { %v1049_v46 = vmul.f32 %v1701_v58, %v1033_v39  ;;  %v1050_v5 = vmul.f32 %v1711_v3, %v1034_v45  ;;  %v1051_v6 = vmul.f32 %v1721_v23, %v1035_v25  ;;  %v1052_v16 = vmul.f32 %v1727_v12, %v1036_v47  ;;  %1057 = vst [vmem:[#allocation12] sm:$0xff] %v1041_v55 }
 0x410   :  { %1058 = vst [vmem:[#allocation12 + $0x8] sm:$0xff] %v1042_v51  ;;  %1059 = vst [vmem:[#allocation12 + $0x10] sm:$0xff] %v1043_v53  ;;  %v1053_v22 = vmul.f32 %v1732_v33, %v1037_v4  ;;  %v1054_v28 = vmul.f32 %v1739_v41, %v1038_v24  ;;  %v1055_v35 = vmul.f32 %v1745_v52, %v1039_v13 }
 0x411   :  { %1060 = vst [vmem:[#allocation12 + $0x18] sm:$0xff] %v1044_v60  ;;  %v1056_v43 = vmul.f32 %v1750_v57, %v1040_v27  ;;  %1061 = vst [vmem:[#allocation12 + $0x20] sm:$0xff] %v1045_v63 }
 0x412   :  { %1062 = vst [vmem:[#allocation12 + $0x28] sm:$0xff] %v1046_v9  ;;  %1063 = vst [vmem:[#allocation12 + $0x30] sm:$0xff] %v1047_v30 }
 0x413   :  { %1064 = vst [vmem:[#allocation12 + $0x38] sm:$0xff] %v1048_v49  ;;  %1065 = vst [vmem:[#allocation12 + $0x40] sm:$0xff] %v1049_v46 }
 0x414   :  { %1066 = vst [vmem:[#allocation12 + $0x48] sm:$0xff] %v1050_v5  ;;  %1067 = vst [vmem:[#allocation12 + $0x50] sm:$0xff] %v1051_v6 }
 0x415   :  { %1068 = vst [vmem:[#allocation12 + $0x58] sm:$0xff] %v1052_v16  ;;  %1069 = vst [vmem:[#allocation12 + $0x60] sm:$0xff] %v1053_v22 }
 0x416   :  { %1070 = vst [vmem:[#allocation12 + $0x68] sm:$0xff] %v1054_v28  ;;  %1071 = vst [vmem:[#allocation12 + $0x70] sm:$0xff] %v1055_v35 }
 0x417   :  { %1072 = vst [vmem:[#allocation12 + $0x78] sm:$0xff] %v1056_v43 }
 0x418   :  { %1398 = shalt.err (!%p1395_p13)
}
 0x419   :  { %s1399_s12 = scalar_lea.hbm %s2126_s6, 2048 }
 0x41a   :  { %p1400_p0 = scmp.ne.s32.totalorder %s2126_s6, %s1399_s12  ;;  %p1403_p1 = scmp.lt.u32.totalorder %s1399_s12, %s2126_s6 }
 0x41c   :  { %p1405_p2 = pnand %p1403_p1, %p1400_p0 }
 0x41e   :  { %1408 = shalt.err (!%p1405_p2)
}
 0x41f   :  { %1084 = dma.vmem_to_hbm [thread:$0]  %s1079_s8, 2048, %s2126_s6, [#allocation4], %s1421_s9, %s1421_s9, %s1422_s10  }
 0x420   :  { %1417 = dma.done.wait [#allocation4], 2048  }
 0x421   :  { %1418 = vsyncadd [#allocation4], 4294965248 }
 0x422   :  { %1088 = vsyncpa [#allocation3], 1 }
 0x423   :  { %1089 = vsyncpa [#allocation7], 1 }
 0x424   :  { %1090 = vsyncpa [#allocation10], 1 }
 0x425   :  { %1091 = vsyncpa [#allocation4], 1 }
 0x426   :  { %1092 = vsyncpa [#allocation5], 1 }

</bundles_post_ra>
